<compile_context>
chip_gen: v7x
topology: tpu7x:2x2x1
jax: 0.10.0
libtpu: 0.0.40
codegen_flags: <defaults>
</compile_context>

<pallas_src>
import functools

import jax
import jax.numpy as jnp
from jax import lax
from jax.experimental import pallas as pl
from jax.experimental.pallas import tpu as pltpu


# ----------------------------- Pallas kernel ---------------------------------

def _fused_block_kernel(*refs, TH, H, W, Wp, stride, THo, Wo, oup, inp, hidden,
                        expand, use_res):
    # refs = [x_flat, (w_pw, b_pw)?, w_dw, b_dw, w_proj, b_proj, out, xe_scratch]
    i = 0
    x_ref = refs[i]; i += 1
    if expand:
        w_pw_ref, b_pw_ref = refs[i:i + 2]; i += 2
    w_dw_ref, b_dw_ref, w_proj_ref, b_proj_ref = refs[i:i + 4]; i += 4
    o_ref, xe_ref = refs[i], refs[i + 1]

    t = pl.program_id(1)
    row0 = t * TH                                   # first padded row of this tile's halo window
    base = pl.multiple_of(row0 * Wp, 8)             # Wp is a multiple of 8

    # ---- raw input halo window (channels-last, flat spatial); read once, reused for residual ----
    xt = x_ref[pl.ds(base, (TH + 2) * Wp), :]       # ((TH+2)*Wp, inp), f32

    # ---- 1x1 expand (BN scale folded into the weight) + ReLU6 ----
    if expand:
        ye = jnp.dot(xt.astype(jnp.bfloat16), w_pw_ref[...],
                     preferred_element_type=jnp.float32) + b_pw_ref[...]
        ye3 = jnp.clip(ye, 0.0, 6.0).reshape(TH + 2, Wp, hidden)
        # Restore exact zeros on the conv padding ring (BN shift + ReLU6 made it nonzero).
        # Iotas / compares stay pre-broadcast at (TH+2, Wp, 1); one vmul/element after.
        r = lax.broadcasted_iota(jnp.int32, (TH + 2, Wp, 1), 0) + row0
        c = lax.broadcasted_iota(jnp.int32, (TH + 2, Wp, 1), 1)
        valid = ((r >= 1) & (r <= H) & (c >= 1) & (c <= W)).astype(jnp.float32)
        ye3 = ye3 * valid
    else:
        ye3 = xt.reshape(TH + 2, Wp, hidden)        # expand_ratio == 1: pads already exact zeros
    xe_ref[...] = ye3                               # expanded tensor stays in VMEM
    # TODO(synk): when expand is False, skip the scratch round trip (v5e single vst slot).

    # ---- 3x3 depthwise conv (BN scale folded into weight; stride folded into the reads) ----
    wd = w_dw_ref[...]                              # (3, 3, hidden)
    acc = jnp.zeros((THo, Wo, hidden), jnp.float32)
    for kh in range(3):
        for kw in range(3):
            if stride == 1:
                tap = xe_ref[kh:kh + THo, kw:kw + Wo, :]
            else:
                tap = xe_ref[pl.ds(kh, THo, stride=stride),
                             pl.ds(kw, Wo, stride=stride), :]
            # TODO(synk): pltpu.roll-based column shifts + dense-then-subsample (v5e load slot).
            acc = acc + tap * wd[kh, kw, :]
    acc = jnp.clip(acc + b_dw_ref[...], 0.0, 6.0)

    # ---- masked grouped 1x1 projection -> channels-first, lane-dense output ----
    rhs = acc.reshape(THo * Wo, hidden)
    if use_res:
        # Residual folded into the matmul: the weight carries an identity block over the input
        # channels (inp == oup, stride == 1), the RHS carries the raw input window.
        xres = xt.reshape(TH + 2, Wp, inp)[1:1 + TH, 1:1 + W, :].reshape(THo * Wo, inp)
        rhs = jnp.concatenate([rhs, xres], axis=-1)
    y = lax.dot_general(w_proj_ref[...], rhs.astype(jnp.bfloat16),
                        dimension_numbers=(((1,), (1,)), ((), ())),
                        preferred_element_type=jnp.float32)     # (oup, THo*Wo)
    o_ref[...] = y + b_proj_ref[...]


# ------------------------------- forward pass --------------------------------

def _pick_tile_h(H, W, Wp, hidden, stride, vmem_budget_bytes=6 << 20):
    """Largest H-tile: amortize per-grid-step overhead (perf review).  Constraints: divides H,
    stride-aligned, xe scratch within budget, and (unless the whole H is one tile) a
    multiple-of-128 lane-dense output block."""
    Wo = (W - 1) // stride + 1
    for th in range(H, 0, -1):
        if H % th or th % stride:
            continue
        if (th + 2) * Wp * hidden * 4 > vmem_budget_bytes:
            continue
        if H // th == 1 or ((th // stride) * Wo) % 128 == 0:
            return th
    return H


def dy_inverted_residual_forward(x_nchw, others, params, cfg):
    inp, oup = cfg["inp"], cfg["oup"]
    stride, heads = cfg["stride"], cfg["heads"]
    hidden, expand_ratio = cfg["hidden"], cfg["expand_ratio"]
    use_res = (stride == 1 and inp == oup)
    expand = (expand_ratio != 1)

    B, C, H, W = x_nchw.shape
    assert C == inp and oup % heads == 0
    Ho = (H - 1) // stride + 1
    Wo = (W - 1) // stride + 1
    Wp = ((W + 2 + 7) // 8) * 8                      # sublane-aligned padded width
    TH = _pick_tile_h(H, W, Wp, hidden, stride)
    assert H % TH == 0 and TH % stride == 0
    nT = H // TH
    THo = TH // stride
    S = THo * Wo
    assert nT * THo == Ho
    if use_res:
        assert stride == 1 and inp == oup

    x_nchw = x_nchw.astype(jnp.float32)

    # ---- AdaptiveAvgPool2d(1) + MaskGen (tiny; no full-input pool pallas_call) ----
    # TODO(synk): MaskGen is not defined in the source file; modelled as FC(inp->heads*hidden)+sigmoid.
    xp = jnp.mean(x_nchw, axis=(2, 3))
    mask = jax.nn.sigmoid(xp @ params["wm"] + params["bm"][0]).reshape(B, heads, hidden)

    # ---- channels-last zero-padded input, spatial flattened, width sublane-aligned ----
    # TODO(synk): consume NCHW directly / build the halo in-kernel to drop this HBM pad pass.
    x_cl = jnp.transpose(x_nchw, (0, 2, 3, 1))
    xpad = jnp.pad(x_cl, ((0, 0), (1, 1), (1, Wp - W - 1), (0, 0)))
    xflat = xpad.reshape(B, (H + 2) * Wp, inp)

    # ---- fold BN scales into conv weights (exact, f32); per-batch masked projection weight ----
    w_dw_s = params["w_dw"] * params["s_dw"].reshape(1, 1, hidden)
    b_dw = params["b_dw"]
    opg = oup // heads
    w_gT = params["w_gpw_dense"].T * params["s_gpw"].reshape(oup, 1)     # (oup, hidden), scale folded
    w_proj = w_gT[None] * jnp.repeat(mask, opg, axis=1)                  # (B, oup, hidden)
    if use_res:
        eye = jnp.broadcast_to(jnp.eye(oup, dtype=jnp.float32), (B, oup, oup))
        w_proj = jnp.concatenate([w_proj, eye], axis=-1)                 # identity passes x_ through
    Kproj = w_proj.shape[-1]
    w_proj = w_proj.astype(jnp.bfloat16)                                 # bf16 MXU operand
    b_proj = params["b_gpw"].reshape(oup, 1)

    in_specs = [pl.BlockSpec((None, (H + 2) * Wp, inp), lambda b, t: (b, 0, 0))]
    args = [xflat]
    if expand:
        w_pw_s = (params["w_pw"] * params["s_pw"]).astype(jnp.bfloat16)  # (inp, hidden)
        in_specs += [pl.BlockSpec((inp, hidden), lambda b, t: (0, 0)),
                     pl.BlockSpec((1, hidden), lambda b, t: (0, 0))]
        args += [w_pw_s, params["b_pw"]]
    in_specs += [pl.BlockSpec((3, 3, hidden), lambda b, t: (0, 0, 0)),
                 pl.BlockSpec((1, hidden), lambda b, t: (0, 0)),
                 pl.BlockSpec((None, oup, Kproj), lambda b, t: (b, 0, 0)),
                 pl.BlockSpec((oup, 1), lambda b, t: (0, 0))]
    args += [w_dw_s, b_dw, w_proj, b_proj]

    flops = B * Ho * Wo * hidden * 18 + 2 * B * Ho * Wo * oup * Kproj
    if expand:
        flops += 2 * B * H * W * inp * hidden
    bytes_accessed = (4 * xflat.size + 2 * w_proj.size + 4 * B * oup * Ho * Wo
                      + 4 * hidden * (inp + 9 + 2) + 4 * oup)

    y_flat = pl.pallas_call(
        functools.partial(_fused_block_kernel, TH=TH, H=H, W=W, Wp=Wp, stride=stride,
                          THo=THo, Wo=Wo, oup=oup, inp=inp, hidden=hidden,
                          expand=expand, use_res=use_res),
        grid=(B, nT),
        in_specs=in_specs,
        out_specs=pl.BlockSpec((None, oup, S), lambda b, t: (b, 0, t)),
        out_shape=jax.ShapeDtypeStruct((B, oup, Ho * Wo), jnp.float32),
        scratch_shapes=[pltpu.VMEM((TH + 2, Wp, hidden), jnp.float32)],
        compiler_params=pltpu.CompilerParams(
            dimension_semantics=("parallel", "parallel")),
        cost_estimate=pl.CostEstimate(flops=int(flops), transcendentals=0,
                                      bytes_accessed=int(bytes_accessed)),
    )(*args)
    y = y_flat.reshape(B, oup, Ho, Wo)               # already NCHW: free reshape, no transpose

    # ---- get_others(): flops bookkeeping (attention == False), from the tiny mask ----
    flops_pw = (inp * hidden * H * W + hidden * H * W) if expand else 0
    flops_dw = 9 * hidden * Ho * Wo + hidden * Ho * Wo
    flops_dgc = hidden * oup * Ho * Wo
    mmean = jnp.mean(mask)
    bonusmean = jnp.mean(jnp.prod(1.0 - mask, axis=1))
    return y, [others[0] + mmean * flops_dgc,
               others[1] + bonusmean * (flops_pw + flops_dw)]


# ------------------------- deterministic parameters ---------------------------

def make_params(key, inp, oup, hidden, heads):
    ks = jax.random.split(key, 8)
    eps = 1e-5

    def bn_fold(k, c):
        k1, k2, k3, k4 = jax.random.split(k, 4)
        gamma = 1.0 + 0.1 * jax.random.normal(k1, (c,), jnp.float32)
        beta = 0.1 * jax.random.normal(k2, (c,), jnp.float32)
        mean = 0.1 * jax.random.normal(k3, (c,), jnp.float32)
        var = 1.0 + 0.1 * jnp.abs(jax.random.normal(k4, (c,), jnp.float32))
        scale = gamma / jnp.sqrt(var + eps)
        shift = beta - mean * scale
        return scale.reshape(1, c), shift.reshape(1, c)

    # conv[0] (1x1 expand), torch weight (hidden, inp, 1, 1)
    w_pw_t = 0.2 * jax.random.normal(ks[0], (hidden, inp), jnp.float32)
    s_pw, b_pw = bn_fold(ks[1], hidden)
    # conv[1] (depthwise 3x3), torch weight (hidden, 1, 3, 3)
    w_dw_t = 0.2 * jax.random.normal(ks[2], (hidden, 3, 3), jnp.float32)
    s_dw, b_dw = bn_fold(ks[3], hidden)
    # conv[-2] (grouped 1x1), torch weight (oup, hidden, 1, 1), groups=heads
    w_g_t = 0.2 * jax.random.normal(ks[4], (oup, hidden), jnp.float32)
    s_g, b_g = bn_fold(ks[5], oup)
    # synthetic MaskGen: FC (inp -> heads*hidden) + sigmoid
    wm = 0.5 * jax.random.normal(ks[6], (inp, heads * hidden), jnp.float32)
    bm = 0.1 * jax.random.normal(ks[7], (1, heads * hidden), jnp.float32)

    return dict(
        w_pw=w_pw_t.T,                               # (inp, hidden)
        s_pw=s_pw, b_pw=b_pw,
        w_dw=jnp.transpose(w_dw_t, (1, 2, 0)),       # (3, 3, hidden)
        s_dw=s_dw, b_dw=b_dw,
        w_gpw_dense=w_g_t.T,                         # (hidden, oup), dense form of grouped conv
        s_gpw=s_g, b_gpw=b_g,
        wm=wm, bm=bm,
    )


# ------------------------------ pure-JAX reference ----------------------------

def reference_forward(x_nchw, others, params, cfg):
    inp, oup = cfg["inp"], cfg["oup"]
    stride, heads = cfg["stride"], cfg["heads"]
    hidden, expand_ratio = cfg["hidden"], cfg["expand_ratio"]
    use_res = (stride == 1 and inp == oup)
    B, C, H, W = x_nchw.shape
    x_ = x_nchw

    xp = jnp.mean(x_nchw, axis=(2, 3))
    mask = jax.nn.sigmoid(xp @ params["wm"] + params["bm"][0]).reshape(B, heads, hidden)

    x = x_nchw
    if expand_ratio != 1:
        x = jnp.einsum("bchw,cd->bdhw", x, params["w_pw"],
                       precision=jax.lax.Precision.HIGHEST)
        x = x * params["s_pw"][0][None, :, None, None] + params["b_pw"][0][None, :, None, None]
        x = jnp.clip(x, 0.0, 6.0)

    xpad = jnp.pad(x, ((0, 0), (0, 0), (1, 1), (1, 1)))
    Ho = (H + 2 - 3) // stride + 1
    Wo = (W + 2 - 3) // stride + 1
    wdw = params["w_dw"]
    acc = jnp.zeros((B, hidden, Ho, Wo), jnp.float32)
    for dh in range(3):
        for dw in range(3):
            sl = xpad[:, :, dh:dh + (Ho - 1) * stride + 1:stride,
                            dw:dw + (Wo - 1) * stride + 1:stride]
            acc = acc + sl * wdw[dh, dw, :][None, :, None, None]
    x = acc * params["s_dw"][0][None, :, None, None] + params["b_dw"][0][None, :, None, None]
    x = jnp.clip(x, 0.0, 6.0)

    opg = oup // heads
    outs = []
    for g in range(heads):
        xm = x * mask[:, g, :][:, :, None, None]
        wg = params["w_gpw_dense"][:, g * opg:(g + 1) * opg]
        outs.append(jnp.einsum("bchw,co->bohw", xm, wg,
                               precision=jax.lax.Precision.HIGHEST))
    y = jnp.concatenate(outs, axis=1)
    y = y * params["s_gpw"][0][None, :, None, None] + params["b_gpw"][0][None, :, None, None]
    if use_res:
        y = x_ + y

    flops_pw = (inp * hidden * H * W + hidden * H * W) if expand_ratio != 1 else 0
    flops_dw = 9 * hidden * Ho * Wo + hidden * Ho * Wo
    flops_dgc = hidden * oup * Ho * Wo
    mask_bonus = 1.0 - mask[:, 0, :]
    for i in range(1, heads):
        mask_bonus = mask_bonus * (1.0 - mask[:, i, :])
    return y, [others[0] + jnp.mean(mask) * flops_dgc,
               others[1] + jnp.mean(mask_bonus) * (flops_pw + flops_dw)]


# ------------------------------------ main ------------------------------------

if __name__ == "__main__":
    configs = [
        # (B, inp, oup, H, W, stride, expand_ratio, heads)
        dict(B=2, inp=16, oup=16, H=16, W=16, stride=1, expand_ratio=4, heads=2),  # residual
        dict(B=2, inp=16, oup=24, H=16, W=16, stride=2, expand_ratio=6, heads=2),  # strided
        dict(B=2, inp=32, oup=32, H=8,  W=8,  stride=1, expand_ratio=1, heads=2),  # no expand
    ]

    key = jax.random.PRNGKey(0)
    for c in configs:
        hidden = int(round(c["inp"] * c["expand_ratio"]))
        cfg = dict(inp=c["inp"], oup=c["oup"], stride=c["stride"],
                   expand_ratio=c["expand_ratio"], heads=c["heads"], hidden=hidden)
        key, kx, kp = jax.random.split(key, 3)
        x = jax.random.normal(kx, (c["B"], c["inp"], c["H"], c["W"]), jnp.float32)
        params = make_params(kp, c["inp"], c["oup"], hidden, c["heads"])
        others = [jnp.float32(0.0), jnp.float32(0.0)]

        y, (fdgc, bonus) = dy_inverted_residual_forward(x, others, params, cfg)
        jax.block_until_ready(y)

        y_ref, (fdgc_ref, bonus_ref) = reference_forward(x, others, params, cfg)
        assert y.shape == y_ref.shape, (y.shape, y_ref.shape)
        err = float(jnp.max(jnp.abs(y - y_ref)))
        # tolerance accounts for bf16 MXU operands vs the HIGHEST-precision f32 reference
        assert jnp.allclose(y, y_ref, atol=3e-2, rtol=3e-2), (c, err)
        assert jnp.allclose(fdgc, fdgc_ref, rtol=1e-2), c
        assert jnp.allclose(bonus, bonus_ref, rtol=1e-2), c

    print("KERNEL_OK")
</pallas_src>

<mosaic_0001>
module attributes {stable_mosaic.version = 11 : i64} {
  func.func @_fused_block_kernel(%arg0: i32, %arg1: i32, %arg2: memref<1x432x16xf32, #tpu.memory_space<vmem>>, %arg3: memref<16x64xbf16, #tpu.memory_space<vmem>>, %arg4: memref<1x64xf32, #tpu.memory_space<vmem>>, %arg5: memref<3x3x64xf32, #tpu.memory_space<vmem>>, %arg6: memref<1x64xf32, #tpu.memory_space<vmem>>, %arg7: memref<1x16x80xbf16, #tpu.memory_space<vmem>>, %arg8: memref<16x1xf32, #tpu.memory_space<vmem>>, %arg9: memref<1x16x256xf32, #tpu.memory_space<vmem>>, %arg10: memref<18x24x64xf32, #tpu.memory_space<vmem>>) attributes {dimension_semantics = [#tpu.dimension_semantics<parallel>, #tpu.dimension_semantics<parallel>], iteration_bounds = array<i64: 2, 1>, scalar_prefetch = 0 : i64, scratch_operands = 1 : i64, tpu.core_type = #tpu.core_type<tc>, window_params = [{transform_indices = @transform_0, window_bounds = array<i64: 1, 432, 16>}, {pipeline_mode = #tpu.pipeline_mode<synchronous>, transform_indices = @transform_1, window_bounds = array<i64: 16, 64>}, {pipeline_mode = #tpu.pipeline_mode<synchronous>, transform_indices = @transform_2, window_bounds = array<i64: 1, 64>}, {pipeline_mode = #tpu.pipeline_mode<synchronous>, transform_indices = @transform_3, window_bounds = array<i64: 3, 3, 64>}, {pipeline_mode = #tpu.pipeline_mode<synchronous>, transform_indices = @transform_4, window_bounds = array<i64: 1, 64>}, {transform_indices = @transform_5, window_bounds = array<i64: 1, 16, 80>}, {pipeline_mode = #tpu.pipeline_mode<synchronous>, transform_indices = @transform_6, window_bounds = array<i64: 16, 1>}, {transform_indices = @transform_7, window_bounds = array<i64: 1, 16, 256>}]} {
    %c16_i32 = arith.constant 16 : i32
    %0 = arith.muli %arg1, %c16_i32 : i32
    %c24_i32 = arith.constant 24 : i32
    %1 = arith.muli %0, %c24_i32 : i32
    %2 = tpu.assume_multiple %1, 8 : i32
    %c0 = arith.constant 0 : index
    %3 = arith.index_cast %2 : i32 to index
    %c0_0 = arith.constant 0 : index
    %4 = vector.load %arg2[%c0, %3, %c0_0] : memref<1x432x16xf32, #tpu.memory_space<vmem>>, vector<1x432x16xf32>
    %5 = vector.shape_cast %4 : vector<1x432x16xf32> to vector<432x16xf32>
    %6 = arith.truncf %5 : vector<432x16xf32> to vector<432x16xbf16>
    %c0_1 = arith.constant 0 : index
    %c0_2 = arith.constant 0 : index
    %7 = vector.load %arg3[%c0_1, %c0_2] : memref<16x64xbf16, #tpu.memory_space<vmem>>, vector<16x64xbf16>
    %cst = arith.constant dense<0.000000e+00> : vector<432x64xf32>
    %8 = tpu.matmul %6, %7, %cst {dimension_numbers = #tpu.dot_dimension_numbers<[1], [0], [0], [1], [0, 0, 1, 1], [], []>} : vector<432x16xbf16>, vector<16x64xbf16>, vector<432x64xf32> -> vector<432x64xf32>
    %c0_3 = arith.constant 0 : index
    %c0_4 = arith.constant 0 : index
    %9 = vector.load %arg4[%c0_3, %c0_4] : memref<1x64xf32, #tpu.memory_space<vmem>>, vector<1x64xf32>
    %10 = vector.broadcast %9 : vector<1x64xf32> to vector<432x64xf32>
    %11 = arith.addf %8, %10 : vector<432x64xf32>
    %cst_5 = arith.constant 0.000000e+00 : f32
    %cst_6 = arith.constant 6.000000e+00 : f32
    %12 = vector.broadcast %cst_5 : f32 to vector<432x64xf32>
    %13 = arith.maximumf %12, %11 : vector<432x64xf32>
    %14 = vector.broadcast %cst_6 : f32 to vector<432x64xf32>
    %15 = arith.minimumf %14, %13 : vector<432x64xf32>
    %16 = vector.shape_cast %15 : vector<432x64xf32> to vector<18x24x64xf32>
    %17 = tpu.iota {dimensions = array<i32: 0>} : vector<18x24x1xi32>
    %18 = vector.broadcast %0 : i32 to vector<18x24x1xi32>
    %19 = arith.addi %17, %18 : vector<18x24x1xi32>
    %20 = tpu.iota {dimensions = array<i32: 1>} : vector<18x24x1xi32>
    %c1_i32 = arith.constant 1 : i32
    %21 = vector.broadcast %c1_i32 : i32 to vector<18x24x1xi32>
    %22 = arith.cmpi sge, %19, %21 : vector<18x24x1xi32>
    %c16_i32_7 = arith.constant 16 : i32
    %23 = vector.broadcast %c16_i32_7 : i32 to vector<18x24x1xi32>
    %24 = arith.cmpi sle, %19, %23 : vector<18x24x1xi32>
    %25 = arith.andi %22, %24 : vector<18x24x1xi1>
    %c1_i32_8 = arith.constant 1 : i32
    %26 = vector.broadcast %c1_i32_8 : i32 to vector<18x24x1xi32>
    %27 = arith.cmpi sge, %20, %26 : vector<18x24x1xi32>
    %28 = arith.andi %25, %27 : vector<18x24x1xi1>
    %c16_i32_9 = arith.constant 16 : i32
    %29 = vector.broadcast %c16_i32_9 : i32 to vector<18x24x1xi32>
    %30 = arith.cmpi sle, %20, %29 : vector<18x24x1xi32>
    %31 = arith.andi %28, %30 : vector<18x24x1xi1>
    %32 = arith.extui %31 : vector<18x24x1xi1> to vector<18x24x1xi32>
    %33 = arith.sitofp %32 : vector<18x24x1xi32> to vector<18x24x1xf32>
    %34 = vector.broadcast %33 : vector<18x24x1xf32> to vector<18x24x64xf32>
    %35 = arith.mulf %16, %34 : vector<18x24x64xf32>
    %c0_10 = arith.constant 0 : index
    %c0_11 = arith.constant 0 : index
    %c0_12 = arith.constant 0 : index
    %36 = vector.load %arg10[%c0_10, %c0_11, %c0_12] : memref<18x24x64xf32, #tpu.memory_space<vmem>>, vector<18x24x64xf32>
    tpu.vector_store %arg10[%c0_10, %c0_11, %c0_12], %35 {strides = array<i32>} : memref<18x24x64xf32, #tpu.memory_space<vmem>>, vector<18x24x64xf32>,
    %c0_13 = arith.constant 0 : index
    %c0_14 = arith.constant 0 : index
    %c0_15 = arith.constant 0 : index
    %37 = vector.load %arg5[%c0_13, %c0_14, %c0_15] : memref<3x3x64xf32, #tpu.memory_space<vmem>>, vector<3x3x64xf32>
    %cst_16 = arith.constant 0.000000e+00 : f32
    %38 = vector.broadcast %cst_16 : f32 to vector<16x16x64xf32>
    %c0_17 = arith.constant 0 : index
    %c0_18 = arith.constant 0 : index
    %c0_19 = arith.constant 0 : index
    %39 = vector.load %arg10[%c0_17, %c0_18, %c0_19] : memref<18x24x64xf32, #tpu.memory_space<vmem>>, vector<16x16x64xf32>
    %40 = vector.extract_strided_slice %37 {offsets = [0, 0, 0], sizes = [1, 1, 64], strides = [1, 1, 1]} : vector<3x3x64xf32> to vector<1x1x64xf32>
    %41 = vector.shape_cast %40 : vector<1x1x64xf32> to vector<64xf32>
    %42 = vector.shape_cast %41 : vector<64xf32> to vector<1x1x64xf32>
    %43 = vector.broadcast %42 : vector<1x1x64xf32> to vector<16x16x64xf32>
    %44 = arith.mulf %39, %43 : vector<16x16x64xf32>
    %45 = arith.addf %38, %44 : vector<16x16x64xf32>
    %c0_20 = arith.constant 0 : index
    %c1 = arith.constant 1 : index
    %c0_21 = arith.constant 0 : index
    %46 = vector.load %arg10[%c0_20, %c1, %c0_21] : memref<18x24x64xf32, #tpu.memory_space<vmem>>, vector<16x16x64xf32>
    %47 = vector.extract_strided_slice %37 {offsets = [0, 1, 0], sizes = [1, 1, 64], strides = [1, 1, 1]} : vector<3x3x64xf32> to vector<1x1x64xf32>
    %48 = vector.shape_cast %47 : vector<1x1x64xf32> to vector<64xf32>
    %49 = vector.shape_cast %48 : vector<64xf32> to vector<1x1x64xf32>
    %50 = vector.broadcast %49 : vector<1x1x64xf32> to vector<16x16x64xf32>
    %51 = arith.mulf %46, %50 : vector<16x16x64xf32>
    %52 = arith.addf %45, %51 : vector<16x16x64xf32>
    %c0_22 = arith.constant 0 : index
    %c2 = arith.constant 2 : index
    %c0_23 = arith.constant 0 : index
    %53 = vector.load %arg10[%c0_22, %c2, %c0_23] : memref<18x24x64xf32, #tpu.memory_space<vmem>>, vector<16x16x64xf32>
    %54 = vector.extract_strided_slice %37 {offsets = [0, 2, 0], sizes = [1, 1, 64], strides = [1, 1, 1]} : vector<3x3x64xf32> to vector<1x1x64xf32>
    %55 = vector.shape_cast %54 : vector<1x1x64xf32> to vector<64xf32>
    %56 = vector.shape_cast %55 : vector<64xf32> to vector<1x1x64xf32>
    %57 = vector.broadcast %56 : vector<1x1x64xf32> to vector<16x16x64xf32>
    %58 = arith.mulf %53, %57 : vector<16x16x64xf32>
    %59 = arith.addf %52, %58 : vector<16x16x64xf32>
    %c1_24 = arith.constant 1 : index
    %c0_25 = arith.constant 0 : index
    %c0_26 = arith.constant 0 : index
    %60 = vector.load %arg10[%c1_24, %c0_25, %c0_26] : memref<18x24x64xf32, #tpu.memory_space<vmem>>, vector<16x16x64xf32>
    %61 = vector.extract_strided_slice %37 {offsets = [1, 0, 0], sizes = [1, 1, 64], strides = [1, 1, 1]} : vector<3x3x64xf32> to vector<1x1x64xf32>
    %62 = vector.shape_cast %61 : vector<1x1x64xf32> to vector<64xf32>
    %63 = vector.shape_cast %62 : vector<64xf32> to vector<1x1x64xf32>
    %64 = vector.broadcast %63 : vector<1x1x64xf32> to vector<16x16x64xf32>
    %65 = arith.mulf %60, %64 : vector<16x16x64xf32>
    %66 = arith.addf %59, %65 : vector<16x16x64xf32>
    %c1_27 = arith.constant 1 : index
    %c1_28 = arith.constant 1 : index
    %c0_29 = arith.constant 0 : index
    %67 = vector.load %arg10[%c1_27, %c1_28, %c0_29] : memref<18x24x64xf32, #tpu.memory_space<vmem>>, vector<16x16x64xf32>
    %68 = vector.extract_strided_slice %37 {offsets = [1, 1, 0], sizes = [1, 1, 64], strides = [1, 1, 1]} : vector<3x3x64xf32> to vector<1x1x64xf32>
    %69 = vector.shape_cast %68 : vector<1x1x64xf32> to vector<64xf32>
    %70 = vector.shape_cast %69 : vector<64xf32> to vector<1x1x64xf32>
    %71 = vector.broadcast %70 : vector<1x1x64xf32> to vector<16x16x64xf32>
    %72 = arith.mulf %67, %71 : vector<16x16x64xf32>
    %73 = arith.addf %66, %72 : vector<16x16x64xf32>
    %c1_30 = arith.constant 1 : index
    %c2_31 = arith.constant 2 : index
    %c0_32 = arith.constant 0 : index
    %74 = vector.load %arg10[%c1_30, %c2_31, %c0_32] : memref<18x24x64xf32, #tpu.memory_space<vmem>>, vector<16x16x64xf32>
    %75 = vector.extract_strided_slice %37 {offsets = [1, 2, 0], sizes = [1, 1, 64], strides = [1, 1, 1]} : vector<3x3x64xf32> to vector<1x1x64xf32>
    %76 = vector.shape_cast %75 : vector<1x1x64xf32> to vector<64xf32>
    %77 = vector.shape_cast %76 : vector<64xf32> to vector<1x1x64xf32>
    %78 = vector.broadcast %77 : vector<1x1x64xf32> to vector<16x16x64xf32>
    %79 = arith.mulf %74, %78 : vector<16x16x64xf32>
    %80 = arith.addf %73, %79 : vector<16x16x64xf32>
    %c2_33 = arith.constant 2 : index
    %c0_34 = arith.constant 0 : index
    %c0_35 = arith.constant 0 : index
    %81 = vector.load %arg10[%c2_33, %c0_34, %c0_35] : memref<18x24x64xf32, #tpu.memory_space<vmem>>, vector<16x16x64xf32>
    %82 = vector.extract_strided_slice %37 {offsets = [2, 0, 0], sizes = [1, 1, 64], strides = [1, 1, 1]} : vector<3x3x64xf32> to vector<1x1x64xf32>
    %83 = vector.shape_cast %82 : vector<1x1x64xf32> to vector<64xf32>
    %84 = vector.shape_cast %83 : vector<64xf32> to vector<1x1x64xf32>
    %85 = vector.broadcast %84 : vector<1x1x64xf32> to vector<16x16x64xf32>
    %86 = arith.mulf %81, %85 : vector<16x16x64xf32>
    %87 = arith.addf %80, %86 : vector<16x16x64xf32>
    %c2_36 = arith.constant 2 : index
    %c1_37 = arith.constant 1 : index
    %c0_38 = arith.constant 0 : index
    %88 = vector.load %arg10[%c2_36, %c1_37, %c0_38] : memref<18x24x64xf32, #tpu.memory_space<vmem>>, vector<16x16x64xf32>
    %89 = vector.extract_strided_slice %37 {offsets = [2, 1, 0], sizes = [1, 1, 64], strides = [1, 1, 1]} : vector<3x3x64xf32> to vector<1x1x64xf32>
    %90 = vector.shape_cast %89 : vector<1x1x64xf32> to vector<64xf32>
    %91 = vector.shape_cast %90 : vector<64xf32> to vector<1x1x64xf32>
    %92 = vector.broadcast %91 : vector<1x1x64xf32> to vector<16x16x64xf32>
    %93 = arith.mulf %88, %92 : vector<16x16x64xf32>
    %94 = arith.addf %87, %93 : vector<16x16x64xf32>
    %c2_39 = arith.constant 2 : index
    %c2_40 = arith.constant 2 : index
    %c0_41 = arith.constant 0 : index
    %95 = vector.load %arg10[%c2_39, %c2_40, %c0_41] : memref<18x24x64xf32, #tpu.memory_space<vmem>>, vector<16x16x64xf32>
    %96 = vector.extract_strided_slice %37 {offsets = [2, 2, 0], sizes = [1, 1, 64], strides = [1, 1, 1]} : vector<3x3x64xf32> to vector<1x1x64xf32>
    %97 = vector.shape_cast %96 : vector<1x1x64xf32> to vector<64xf32>
    %98 = vector.shape_cast %97 : vector<64xf32> to vector<1x1x64xf32>
    %99 = vector.broadcast %98 : vector<1x1x64xf32> to vector<16x16x64xf32>
    %100 = arith.mulf %95, %99 : vector<16x16x64xf32>
    %101 = arith.addf %94, %100 : vector<16x16x64xf32>
    %c0_42 = arith.constant 0 : index
    %c0_43 = arith.constant 0 : index
    %102 = vector.load %arg6[%c0_42, %c0_43] : memref<1x64xf32, #tpu.memory_space<vmem>>, vector<1x64xf32>
    %103 = vector.shape_cast %102 : vector<1x64xf32> to vector<1x1x64xf32>
    %104 = vector.broadcast %103 : vector<1x1x64xf32> to vector<16x16x64xf32>
    %105 = arith.addf %101, %104 : vector<16x16x64xf32>
    %cst_44 = arith.constant 0.000000e+00 : f32
    %cst_45 = arith.constant 6.000000e+00 : f32
    %106 = vector.broadcast %cst_44 : f32 to vector<16x16x64xf32>
    %107 = arith.maximumf %106, %105 : vector<16x16x64xf32>
    %108 = vector.broadcast %cst_45 : f32 to vector<16x16x64xf32>
    %109 = arith.minimumf %108, %107 : vector<16x16x64xf32>
    %110 = vector.shape_cast %109 : vector<16x16x64xf32> to vector<256x64xf32>
    %111 = vector.shape_cast %5 : vector<432x16xf32> to vector<18x24x16xf32>
    %112 = vector.extract_strided_slice %111 {offsets = [1, 1, 0], sizes = [16, 16, 16], strides = [1, 1, 1]} : vector<18x24x16xf32> to vector<16x16x16xf32>
    %113 = vector.shape_cast %112 : vector<16x16x16xf32> to vector<256x16xf32>
    %114 = tpu.concatenate %110, %113 in 1 : vector<256x64xf32>, vector<256x16xf32> -> vector<256x80xf32>
    %c0_46 = arith.constant 0 : index
    %c0_47 = arith.constant 0 : index
    %c0_48 = arith.constant 0 : index
    %115 = vector.load %arg7[%c0_46, %c0_47, %c0_48] : memref<1x16x80xbf16, #tpu.memory_space<vmem>>, vector<1x16x80xbf16>
    %116 = vector.shape_cast %115 : vector<1x16x80xbf16> to vector<16x80xbf16>
    %117 = arith.truncf %114 : vector<256x80xf32> to vector<256x80xbf16>
    %cst_49 = arith.constant dense<0.000000e+00> : vector<16x256xf32>
    %118 = tpu.matmul %116, %117, %cst_49 {dimension_numbers = #tpu.dot_dimension_numbers<[1], [1], [0], [0], [0, 0, 1, 0], [], []>} : vector<16x80xbf16>, vector<256x80xbf16>, vector<16x256xf32> -> vector<16x256xf32>
    %c0_50 = arith.constant 0 : index
    %c0_51 = arith.constant 0 : index
    %119 = vector.load %arg8[%c0_50, %c0_51] : memref<16x1xf32, #tpu.memory_space<vmem>>, vector<16x1xf32>
    %120 = vector.broadcast %119 : vector<16x1xf32> to vector<16x256xf32>
    %121 = arith.addf %118, %120 : vector<16x256xf32>
    %c0_52 = arith.constant 0 : index
    %c0_53 = arith.constant 0 : index
    %c0_54 = arith.constant 0 : index
    %122 = vector.load %arg9[%c0_52, %c0_53, %c0_54] : memref<1x16x256xf32, #tpu.memory_space<vmem>>, vector<1x16x256xf32>
    %123 = vector.shape_cast %122 : vector<1x16x256xf32> to vector<16x256xf32>
    %124 = vector.shape_cast %121 : vector<16x256xf32> to vector<1x16x256xf32>
    tpu.vector_store %arg9[%c0_52, %c0_53, %c0_54], %124 {strides = array<i32>} : memref<1x16x256xf32, #tpu.memory_space<vmem>>, vector<1x16x256xf32>,
    return
  }
  func.func @transform_0(%arg0: i32, %arg1: i32) -> (i32, i32, i32) {
    %c0_i32 = arith.constant 0 : i32
    %c0_i32_0 = arith.constant 0 : i32
    %c0_i32_1 = arith.constant 0 : i32
    return %arg0, %c0_i32, %c0_i32_0 : i32, i32, i32
  }
  func.func @transform_1(%arg0: i32, %arg1: i32) -> (i32, i32) {
    %c0_i32 = arith.constant 0 : i32
    %c0_i32_0 = arith.constant 0 : i32
    %c0_i32_1 = arith.constant 0 : i32
    return %c0_i32, %c0_i32_0 : i32, i32
  }
  func.func @transform_2(%arg0: i32, %arg1: i32) -> (i32, i32) {
    %c0_i32 = arith.constant 0 : i32
    %c0_i32_0 = arith.constant 0 : i32
    %c0_i32_1 = arith.constant 0 : i32
    return %c0_i32, %c0_i32_0 : i32, i32
  }
  func.func @transform_3(%arg0: i32, %arg1: i32) -> (i32, i32, i32) {
    %c0_i32 = arith.constant 0 : i32
    %c0_i32_0 = arith.constant 0 : i32
    %c0_i32_1 = arith.constant 0 : i32
    %c0_i32_2 = arith.constant 0 : i32
    return %c0_i32, %c0_i32_0, %c0_i32_1 : i32, i32, i32
  }
  func.func @transform_4(%arg0: i32, %arg1: i32) -> (i32, i32) {
    %c0_i32 = arith.constant 0 : i32
    %c0_i32_0 = arith.constant 0 : i32
    %c0_i32_1 = arith.constant 0 : i32
    return %c0_i32, %c0_i32_0 : i32, i32
  }
  func.func @transform_5(%arg0: i32, %arg1: i32) -> (i32, i32, i32) {
    %c0_i32 = arith.constant 0 : i32
    %c0_i32_0 = arith.constant 0 : i32
    %c0_i32_1 = arith.constant 0 : i32
    return %arg0, %c0_i32, %c0_i32_0 : i32, i32, i32
  }
  func.func @transform_6(%arg0: i32, %arg1: i32) -> (i32, i32) {
    %c0_i32 = arith.constant 0 : i32
    %c0_i32_0 = arith.constant 0 : i32
    %c0_i32_1 = arith.constant 0 : i32
    return %c0_i32, %c0_i32_0 : i32, i32
  }
  func.func @transform_7(%arg0: i32, %arg1: i32) -> (i32, i32, i32) {
    %c0_i32 = arith.constant 0 : i32
    %c0_i32_0 = arith.constant 0 : i32
    return %arg0, %c0_i32, %arg1 : i32, i32, i32
  }
}

</mosaic_0001>

<bundles_post_ra>
// kernel: tpu_custom_call.1
= control target key start
LH: loop header
LB: loop body
LE: loop exit
PB: predicated region body
PF: predicated region fallthrough
CT: control target
= control target key end

     0   :  { %12 = vsyncpa [#allocation4], 0  ;;  %s4997_s0 = inlined_call_operand.vmem [shape: f32[2,432,16], index: 0, kind: input, shape index: {}]   ;;  %s4998_s1 = inlined_call_operand.vmem [shape: bf16[16,64], index: 1, kind: input, shape index: {}]   ;;  %s4999_s2 = inlined_call_operand.vmem [shape: f32[1,64], index: 2, kind: input, shape index: {}]   ;;  %s5000_s3 = inlined_call_operand.vmem [shape: f32[3,3,64], index: 3, kind: input, shape index: {}]   ;;  %s5001_s4 = inlined_call_operand.vmem [shape: f32[1,64], index: 4, kind: input, shape index: {}]   ;;  %s5002_s5 = inlined_call_operand.vmem [shape: bf16[2,16,80], index: 5, kind: input, shape index: {}]   ;;  %s5003_s6 = inlined_call_operand.vmem [shape: f32[16,1], index: 6, kind: input, shape index: {}]   ;;  %s5004_s7 = inlined_call_operand.hbm [shape: f32[2,16,256], index: 7, kind: output, shape index: {}]  }
   0x1   :  { %14 = vsyncpa [#allocation4 + $0x1], 0  ;;  %s3288_s24 = smov 0   ;;  %s3290_s25 = smov 0  }
   0x2   :  { %s3292_s26 = smov 0   ;;  %s3294_s27 = smov 0  }
   0x3   :  { %s3296_s28 = smov 0   ;;  %s3298_s29 = smov 0  }
   0x4 LB: > { %s2760_s30 = sadd.s32 4294967295, %s3239_s29   ;;  %s2761_s8 = sadd.s32 4294967294, %s3239_s29   ;;  %s3239_s29 = sphi %s3298_s29, %s20_s29   ;;  %s3235_s28 = sphi %s3296_s28, %s5107_s28   ;;  %s3231_s27 = sphi %s3294_s27, %s5106_s27   ;;  %s3227_s26 = sphi %s3292_s26, %s5105_s26   ;;  %s3223_s25 = sphi %s3290_s25, %s5104_s25   ;;  %s3219_s24 = sphi %s3288_s24, %s5103_s24  }
   0x5   : > { %s32_s9 = sadd.s32 1, %s3235_s28  ;;  %s198_s10 = sadd.s32 1, %s3227_s26 }
   0x6   : > { %p34_p0 = scmp.ge.s32.totalorder %s32_s9, 2  ;;  %p208_p1 = scmp.ne.s32.totalorder %s3227_s26, %s3223_s25 }
   0x7   : > { %p209_p2 = scmp.eq.s32.totalorder %s2760_s30, 1  ;;  %p214_p3 = scmp.ne.s32.totalorder %s3223_s25, %s3219_s24 }
   0x8   : > { %s5109_s9 = smov (%p34_p0, %s32_s9), 0  ;;  %p215_p5 = scmp.eq.s32.totalorder %s2761_s8, 1 }
   0x9   : > { %p3328_p4 = por %p209_p2, %p208_p1  ;;  %s193_s12 = ssub.s32 %s3235_s28, %s5109_s9 }
   0xa   : > { %p2764_p6 = scmp.ge.s32.totalorder %s3239_s29, 1  ;;  %p196_p7 = scmp.eq.s32.totalorder %s193_s12, 0 }
   0xb   : > { %p3335_p8 = por %p215_p5, %p214_p3  ;;  %p264_p9 = scmp.lt.s32.totalorder %s3239_s29, 3 }
   0xc   : > { %s3341_s14 = scalar_select %p196_p7, %s3227_s26, %s198_s10  }
   0xd   : > { %p265_p10 = pnand %p2764_p6, %p264_p9 }
   0xf   : > { %268 = sbr.rel (%p265_p10) target bundleno = 741 (0x2e5), region = 48 }
  0x16   : > { %v3150_v0 = vld [vmem:[%s4998_s1] sm:$0xff]   ;;  %v3241_v1 = vmov 0.0   ;;  %p301_p11 = scmp.lt.s32.totalorder %s3231_s27, 1  ;;  %vm3242_vm0 = vmmov 0   ;;  %vm412_vm1 = vcmask 130048   ;;  %vm2314_vm2 = vcmask 1046528  }
  0x17   : > { %2886 = vmatprep.subr.bf16.mxu0 %v3241_v1  ;;  %2996 = vmatprep.subr.bf16.mxu1 %v3241_v1  ;;  %s3243_s22 = smov 64   ;;  %vm1203_vm3 = vcmask 523264   ;;  %vm2558_vm6 = vcmask 654336  }
  0x18   : > { %2887 = vmatpush3.bf16.msra.mxu0 %v3150_v0  ;;  %2888 = vmatprep.mubr.msk.bf16.mxu0 %vm3242_vm0, %v3241_v1  ;;  %s3352_s17 = scalar_select %p301_p11, %s3231_s27, 1 }
  0x19   : > { %2997 = vmatpush3.bf16.msra.mxu1 %v3150_v0  ;;  %2944 = vmatprep.mubr.msk.bf16.mxu1 %vm3242_vm0, %v3241_v1 }
  0x1a   : > { %s3006_s18 = smul.u32 432, %s3352_s17  ;;  %s2838_s23 = sshll.u32 %s3352_s17, 3 }
  0x1b   : > { %s4387_s10 = scalar_lea.vmem %s5002_s5, %s2838_s23  ;;  %s2839_s17 = sshll.u32 %s3231_s27, 9 }
  0x1c   : > { %s3360_s21 = scalar_lea.vmem %s4997_s0, %s3006_s18  ;;  %s4949_s15 = scalar_lea.hbm %s5004_s7, %s2839_s17 }
  0x1d   : > { %v316_v2 = vld [vmem:[%s3360_s21] sm:$0xff]  ;;  %v317_v3 = vld [vmem:[%s3360_s21 + $0x8] sm:$0xff]  ;;  %v319_v5 = vld [vmem:[%s3360_s21 + $0x18] sm:$0xff]  ;;  %s3245_s18 = smov [#allocation3]  }
  0x1e   : > { %v370_v4 = vpack.c.bf16 %v317_v3, %v316_v2  ;;  %v3366_v6 = vld [vmem:[%s3360_s21 + $0x20] sm:$0xff]  ;;  %v3369_v7 = vld [vmem:[%s3360_s21 + $0x28] sm:$0xff]  ;;  %v3372_v8 = vld [vmem:[%s3360_s21 + $0x30] sm:$0xff]  ;;  %v2315_v10 = vrot.slane %v319_v5, 1  ;;  %s3165_s19 = sshll.u32 %s3245_s18, 4  ;;  %s3166_s19 = int_to_ptr.vmem [resolvable:$false] %s3165_s19 }
  0x1f   : > { %v3375_v9 = vld [vmem:[%s3360_s21 + $0x38] sm:$0xff]  ;;  %v2316_v11 = vrot.slane %v3366_v6, 1  ;;  %v3380_v12 = vld [vmem:[%s3360_s21 + $0x40] sm:$0xff]  ;;  %v2318_v13 = vrot.slane %v3369_v7, 1  ;;  %v2320_v14 = vrot.slane %v3372_v8, 1  ;;  %v318_v16 = vld [vmem:[%s3360_s21 + $0x10] sm:$0xff]  ;;  %v372_v53 = vpack.c.bf16 %v3369_v7, %v3366_v6 }
  0x20   : > { %2889 = vmatmul.mubr.msk.bf16.vlgmr.msra.gmra.mrb[0].mxu0 %vm412_vm1, %v370_v4  ;;  %v2321_v15 = vrot.slane %v3375_v9, 1  ;;  %v2323_v18 = vrot.slane %v3380_v12, 1  ;;  %v344_v21 = vld [vmem:[%s3360_s21 + $0xe0] sm:$0xff]  ;;  %v371_v24 = vpack.c.bf16 %v319_v5, %v318_v16  ;;  %v345_v25 = vld [vmem:[%s3360_s21 + $0xe8] sm:$0xff]  ;;  %v3399_v28 = vld [vmem:[%s3360_s21 + $0x50] sm:$0xff]  ;;  %v373_v16 = vpack.c.bf16 %v3375_v9, %v3372_v8  ;;  %s3167_s20 = scalar_lea.vmem %s3166_s19, 1024 }
  0x21   : > { %2892 = vmatprep.mubr.msk.bf16.mxu0 %vm3242_vm0, %v3241_v1  ;;  %v2317_v17 = vsel %vm2314_vm2, %v2315_v10, %v2316_v11  ;;  %v2319_v19 = vsel %vm2314_vm2, %v2316_v11, %v2318_v13  ;;  %v3396_v27 = vld [vmem:[%s3360_s21 + $0x48] sm:$0xff]  ;;  %v384_v29 = vpack.c.bf16 %v345_v25, %v344_v21  ;;  %v2356_v30 = vrot.slane %v344_v21, 1  ;;  %v3403_v32 = vld [vmem:[%s3360_s21 + $0x58] sm:$0xff]  ;;  %v3410_v35 = vld [vmem:[%s3360_s21 + $0xf0] sm:$0xff] }
  0x22   : > { %v2322_v20 = vsel %vm2314_vm2, %v2320_v14, %v2321_v15  ;;  %v3068_v22 = vpack.i.bf16 %v2319_v19, %v2317_v17  ;;  %v2324_v23 = vsel %vm2314_vm2, %v2321_v15, %v2323_v18  ;;  %v2358_v31 = vrot.slane %v345_v25, 1  ;;  %v3413_v36 = vld [vmem:[%s3360_s21 + $0xf8] sm:$0xff]  ;;  %v3420_v38 = vld [vmem:[%s3360_s21 + $0xd0] sm:$0xff]  ;;  %v3428_v40 = vld [vmem:[%s3360_s21 + $0x60] sm:$0xff] }
  0x23   : > { %v3078_v26 = vpack.i.bf16 %v2324_v23, %v2322_v20  ;;  %v2325_v33 = vrot.slane %v3396_v27, 1  ;;  %v2326_v34 = vrot.slane %v3399_v28, 1  ;;  %2945 = vmatmul.mubr.msk.bf16.vlgmr.msra.gmra.mrb[0].mxu1 %vm412_vm1, %v384_v29  ;;  %v2328_v37 = vrot.slane %v3403_v32, 1  ;;  %v3423_v39 = vld [vmem:[%s3360_s21 + $0xd8] sm:$0xff]  ;;  %v3435_v44 = vld [vmem:[%s3360_s21 + $0x68] sm:$0xff]  ;;  %v3438_v45 = vld [vmem:[%s3360_s21 + $0x70] sm:$0xff] }
  0x24   : > { %3069 = vrot.lane.b32.xlu0 %v3068_v22, %s3243_s22  ;;  %2948 = vmatprep.mubr.msk.bf16.mxu1 %vm3242_vm0, %v3241_v1  ;;  %v383_v41 = vpack.c.bf16 %v3423_v39, %v3420_v38  ;;  %v2355_v42 = vrot.slane %v3423_v39, 1  ;;  %v2359_v43 = vsel %vm2314_vm2, %v2356_v30, %v2358_v31  ;;  %v385_v46 = vpack.c.bf16 %v3413_v36, %v3410_v35  ;;  %v3451_v55 = vld [vmem:[%s3360_s21 + $0x78] sm:$0xff]  ;;  %v3454_v56 = vld [vmem:[%s3360_s21 + $0x80] sm:$0xff]  ;;  %v3457_v57 = vld [vmem:[%s3360_s21 + $0x88] sm:$0xff] }
  0x25   : > { %3079 = vrot.lane.b32.xlu1 %v3078_v26, %s3243_s22  ;;  %v2327_v47 = vsel %vm2314_vm2, %v2325_v33, %v2326_v34  ;;  %v2330_v48 = vrot.slane %v3428_v40, 1  ;;  %v2329_v50 = vsel %vm2314_vm2, %v2326_v34, %v2328_v37  ;;  %v2331_v51 = vrot.slane %v3435_v44, 1  ;;  %v3464_v61 = vld [vmem:[%s3360_s21 + $0x100] sm:$0xff]  ;;  %v3467_v62 = vld [vmem:[%s3360_s21 + $0x108] sm:$0xff]  ;;  %v3478_v3 = vld [vmem:[%s3360_s21 + $0x90] sm:$0xff] }
  0x26   : > { %v2357_v49 = vsel %vm2314_vm2, %v2355_v42, %v2356_v30  ;;  %v2333_v52 = vrot.slane %v3438_v45, 1  ;;  %v3088_v58 = vpack.i.bf16 %v2329_v50, %v2327_v47  ;;  %v2335_v59 = vrot.slane %v3451_v55, 1  ;;  %v3481_v4 = vld [vmem:[%s3360_s21 + $0x98] sm:$0xff]  ;;  %v3484_v5 = vld [vmem:[%s3360_s21 + $0xa0] sm:$0xff]  ;;  %v3504_v20 = vld [vmem:[%s3360_s21 + $0x110] sm:$0xff] }
  0x27   : > { %v3073_v54 = vpack.i.bf16 %v2359_v43, %v2357_v49  ;;  %v2336_v60 = vrot.slane %v3454_v56, 1  ;;  %v2332_v63 = vsel %vm2314_vm2, %v2330_v48, %v2331_v51  ;;  %v2338_v2 = vrot.slane %v3457_v57, 1  ;;  %v3507_v21 = vld [vmem:[%s3360_s21 + $0x118] sm:$0xff]  ;;  %v3522_v23 = vld [vmem:[%s3360_s21 + $0x120] sm:$0xff]  ;;  %v3538_v26 = vld [vmem:[%s3360_s21 + $0x130] sm:$0xff] }
  0x28   : > { %2893 = vmatmul.mubr.msk.bf16.gmra.mrb[4].mxu0 %vm412_vm1, %v371_v24  ;;  %v2334_v0 = vsel %vm2314_vm2, %v2331_v51, %v2333_v52  ;;  %v386_v6 = vpack.c.bf16 %v3467_v62, %v3464_v61  ;;  %v2340_v13 = vrot.slane %v3478_v3, 1  ;;  %v2341_v14 = vrot.slane %v3481_v4, 1  ;;  %v3525_v24 = vld [vmem:[%s3360_s21 + $0x128] sm:$0xff]  ;;  %v3554_v30 = vld [vmem:[%s3360_s21 + $0x140] sm:$0xff]  ;;  %v3570_v34 = vld [vmem:[%s3360_s21 + $0x150] sm:$0xff] }
  0x29   : > { %2896 = vmatprep.mubr.msk.bf16.mxu0 %vm3242_vm0, %v3241_v1  ;;  %3074 = vrot.lane.b32.xlu0 %v3073_v54, %s3243_s22  ;;  %v3098_v7 = vpack.i.bf16 %v2334_v0, %v2332_v63  ;;  %v2337_v10 = vsel %vm2314_vm2, %v2335_v59, %v2336_v60  ;;  %v2339_v11 = vsel %vm2314_vm2, %v2336_v60, %v2338_v2  ;;  %v2343_v15 = vrot.slane %v3484_v5, 1  ;;  %v3557_v31 = vld [vmem:[%s3360_s21 + $0x148] sm:$0xff]  ;;  %v3573_v37 = vld [vmem:[%s3360_s21 + $0x158] sm:$0xff]  ;;  %v3586_v43 = vld [vmem:[%s3360_s21 + $0x160] sm:$0xff] }
  0x2a   : > { %v3108_v17 = vpack.i.bf16 %v2339_v11, %v2337_v10  ;;  %v2342_v18 = vsel %vm2314_vm2, %v2340_v13, %v2341_v14  ;;  %v387_v9 = vpack.c.bf16 %v3507_v21, %v3504_v20  ;;  %v374_v22 = vpack.c.bf16 %v3396_v27, %v3380_v12  ;;  %v3541_v27 = vld [vmem:[%s3360_s21 + $0x138] sm:$0xff]  ;;  %v3602_v47 = vld [vmem:[%s3360_s21 + $0x170] sm:$0xff]  ;;  %v337_v52 = vld [vmem:[%s3360_s21 + $0xa8] sm:$0xff] }
  0x2b   : > { %2949 = vmatmul.mubr.msk.bf16.gmra.mrb[4].mxu1 %vm412_vm1, %v385_v46  ;;  %v2344_v19 = vsel %vm2314_vm2, %v2341_v14, %v2343_v15  ;;  %v388_v12 = vpack.c.bf16 %v3525_v24, %v3522_v23  ;;  %v375_v25 = vpack.c.bf16 %v3403_v32, %v3399_v28  ;;  %v389_v29 = vpack.c.bf16 %v3541_v27, %v3538_v26  ;;  %v3605_v48 = vld [vmem:[%s3360_s21 + $0x178] sm:$0xff]  ;;  %v340_v13 = vld [vmem:[%s3360_s21 + $0xc0] sm:$0xff]  ;;  %v341_v14 = vld [vmem:[%s3360_s21 + $0xc8] sm:$0xff] }
  0x2c   : > { %2952 = vmatprep.mubr.msk.bf16.mxu1 %vm3242_vm0, %v3241_v1  ;;  %v3118_v8 = vpack.i.bf16 %v2344_v19, %v2342_v18  ;;  %v376_v28 = vpack.c.bf16 %v3435_v44, %v3428_v40  ;;  %v390_v32 = vpack.c.bf16 %v3557_v31, %v3554_v30  ;;  %v377_v33 = vpack.c.bf16 %v3451_v55, %v3438_v45  ;;  %v3589_v44 = vld [vmem:[%s3360_s21 + $0x168] sm:$0xff]  ;;  %v339_v63 = vld [vmem:[%s3360_s21 + $0xb8] sm:$0xff] }
  0x2d   : > { %3089 = vrot.lane.b32.xlu0 %v3088_v58, %s3243_s22  ;;  %v391_v40 = vpack.c.bf16 %v3573_v37, %v3570_v34  ;;  %v378_v42 = vpack.c.bf16 %v3457_v57, %v3454_v56  ;;  %v392_v45 = vpack.c.bf16 %v3589_v44, %v3586_v43  ;;  %v379_v46 = vpack.c.bf16 %v3481_v4, %v3478_v3  ;;  %v3627_v57 = vld [vmem:[%s3360_s21 + $0x188] sm:$0xff] }
  0x2e   : > { %v2360_v49 = vrot.slane %v3410_v35, 1  ;;  %v2361_v50 = vrot.slane %v3413_v36, 1  ;;  %v2363_v51 = vrot.slane %v3464_v61, 1  ;;  %v393_v55 = vpack.c.bf16 %v3605_v48, %v3602_v47  ;;  %v3624_v36 = vld [vmem:[%s3360_s21 + $0x180] sm:$0xff]  ;;  %v338_v61 = vld [vmem:[%s3360_s21 + $0xb0] sm:$0xff] }
  0x2f   : > { %v380_v35 = vpack.c.bf16 %v337_v52, %v3484_v5  ;;  %v2365_v58 = vrot.slane %v3467_v62, 1  ;;  %v2366_v59 = vrot.slane %v3504_v20, 1  ;;  %v2368_v60 = vrot.slane %v3507_v21, 1  ;;  %v3646_v5 = vld [vmem:[%s3360_s21 + $0x190] sm:$0xff] }
  0x30   : > { %2897 = vmatmul.mubr.msk.bf16.gmra.mrb[8].mxu0 %vm412_vm1, %v372_v53  ;;  %v2362_v53 = vsel %vm2314_vm2, %v2360_v49, %v2361_v50  ;;  %v2364_v54 = vsel %vm2314_vm2, %v2361_v50, %v2363_v51  ;;  %v394_v3 = vpack.c.bf16 %v3627_v57, %v3624_v36  ;;  %v381_v4 = vpack.c.bf16 %v339_v63, %v338_v61 }
  0x31   : > { %2900 = vmatprep.mubr.msk.bf16.mxu0 %vm3242_vm0, %v3241_v1  ;;  %3099 = vrot.lane.b32.xlu0 %v3098_v7, %s3243_s22  ;;  %v3083_v56 = vpack.i.bf16 %v2364_v54, %v2362_v53  ;;  %v2367_v0 = vsel %vm2314_vm2, %v2365_v58, %v2366_v59  ;;  %v2369_v2 = vsel %vm2314_vm2, %v2366_v59, %v2368_v60  ;;  %v2345_v7 = vrot.slane %v337_v52, 1  ;;  %v3711_v60 = vld [vmem:[%s4999_s2] ss:$0 sm:$0xff] }
  0x32   : > { %v3093_v62 = vpack.i.bf16 %v2369_v2, %v2367_v0  ;;  %v2346_v10 = vrot.slane %v338_v61, 1  ;;  %v2348_v11 = vrot.slane %v339_v63, 1  ;;  %v2371_v20 = vrot.slane %v3525_v24, 1 }
  0x33   : > { %2953 = vmatmul.mubr.msk.bf16.gmra.mrb[8].mxu1 %vm412_vm1, %v386_v6  ;;  %3084 = vrot.lane.b32.xlu1 %v3083_v56, %s3243_s22  ;;  %v367_v6 = vld [vmem:[%s3360_s21 + $0x198] sm:$0xff]  ;;  %v2373_v21 = vrot.slane %v3538_v26, 1  ;;  %v2350_v24 = vrot.slane %v340_v13, 1  ;;  %v2351_v26 = vrot.slane %v341_v14, 1  ;;  %v2380_v52 = vrot.slane %v3570_v34, 1 }
  0x34   : > { %2956 = vmatprep.mubr.msk.bf16.mxu1 %vm3242_vm0, %v3241_v1  ;;  %v2347_v15 = vsel %vm2314_vm2, %v2345_v7, %v2346_v10  ;;  %v395_v18 = vpack.c.bf16 %v367_v6, %v3646_v5  ;;  %v2381_v53 = vrot.slane %v3573_v37, 1  ;;  %v2388_v54 = vrot.slane %v3605_v48, 1 }
  0x35   : > { %3109 = vrot.lane.b32.xlu0 %v3108_v17, %s3243_s22  ;;  %v2370_v17 = vrot.slane %v3522_v23, 1  ;;  %v368_v23 = vld [vmem:[%s3360_s21 + $0x1a0] sm:$0xff]  ;;  %v2391_v56 = vrot.slane %v3627_v57, 1 }
  0x36   : > { %v2382_v39 = vsel %vm2314_vm2, %v2380_v52, %v2381_v53 }
  0x37   : > { %3094 = vrot.lane.b32.xlu1 %v3093_v62, %s3243_s22 }
  0x38   : > { %2901 = vmatmul.mubr.msk.bf16.gmra.mrb[12].mxu0 %vm412_vm1, %v373_v16  ;;  %v2349_v16 = vsel %vm2314_vm2, %v2346_v10, %v2348_v11  ;;  %v1258_v11 = vld [vmem:[%s5000_s3] sm:$0x7] }
  0x39   : > { %2904 = vmatprep.mubr.msk.bf16.mxu0 %vm3242_vm0, %v3241_v1  ;;  %3119 = vrot.lane.b32.xlu0 %v3118_v8, %s3243_s22  ;;  %v3128_v19 = vpack.i.bf16 %v2349_v16, %v2347_v15  ;;  %v382_v8 = vpack.c.bf16 %v341_v14, %v340_v13 }
  0x3b   : > { %2957 = vmatmul.mubr.msk.bf16.gmra.mrb[12].mxu1 %vm412_vm1, %v387_v9  ;;  %v2372_v9 = vsel %vm2314_vm2, %v2370_v17, %v2371_v20 }
  0x3c   : > { %2960 = vmatprep.mubr.msk.bf16.mxu1 %vm3242_vm0, %v3241_v1 }
  0x3d   : > { %3129 = vrot.lane.b32.xlu0 %v3128_v19, %s3243_s22 }
  0x40   : > { %2905 = vmatmul.mubr.msk.bf16.gmra.mrb[16].mxu0 %vm412_vm1, %v374_v22  ;;  %v2374_v22 = vsel %vm2314_vm2, %v2371_v20, %v2373_v21 }
  0x41   : > { %2908 = vmatprep.mubr.msk.bf16.mxu0 %vm3242_vm0, %v3241_v1 }
  0x43   : > { %2961 = vmatmul.mubr.msk.bf16.gmra.mrb[16].mxu1 %vm412_vm1, %v388_v12  ;;  %v3103_v12 = vpack.i.bf16 %v2374_v22, %v2372_v9 }
  0x44   : > { %2964 = vmatprep.mubr.msk.bf16.mxu1 %vm3242_vm0, %v3241_v1 }
  0x45   : > { %3104 = vrot.lane.b32.xlu1 %v3103_v12, %s3243_s22 }
  0x48   : > { %2909 = vmatmul.mubr.msk.bf16.gmra.mrb[20].mxu0 %vm412_vm1, %v375_v25  ;;  %v369_v25 = vld [vmem:[%s3360_s21 + $0x1a8] sm:$0xff] }
  0x49   : > { %2912 = vmatprep.mubr.msk.bf16.mxu0 %vm3242_vm0, %v3241_v1 }
  0x4b   : > { %2965 = vmatmul.mubr.msk.bf16.gmra.mrb[20].mxu1 %vm412_vm1, %v389_v29  ;;  %v2353_v29 = vrot.slane %v3420_v38, 1  ;;  %v2383_v38 = vrot.slane %v3586_v43, 1  ;;  %v2390_v43 = vrot.slane %v3624_v36, 1  ;;  %v869_v36 = vlaneseq }
  0x4c   : > { %2968 = vmatprep.mubr.msk.bf16.mxu1 %vm3242_vm0, %v3241_v1 }
  0x4d   : > { %v2392_v58 = vsel %vm2314_vm2, %v2390_v43, %v2391_v56  ;;  %v870_v2 = vshrl.u32 %v869_v36, 7 }
  0x4f   : > { %v872_v10 = vadd.s32 16, %v870_v2  ;;  %vm927_vm4 = vcmp.ge.s32.totalorder %v870_v2, 1  ;;  %v1295_v13 = vsub.s32 0, %v870_v2  ;;  %v1395_v16 = vsub.s32 1, %v870_v2 }
  0x50   : > { %2913 = vmatmul.mubr.msk.bf16.gmra.mrb[24].mxu0 %vm412_vm1, %v376_v28  ;;  %v396_v28 = vpack.c.bf16 %v369_v25, %v368_v23  ;;  %v1495_v17 = vsub.s32 2, %v870_v2  ;;  %v1259_v23 = vld [vmem:[%s5000_s3 + $0x4] sm:$0x7] }
  0x51   : > { %2916 = vmatprep.mubr.msk.bf16.mxu0 %vm3242_vm0, %v3241_v1  ;;  %vm986_vm5 = vcmp.le.s32.totalorder %v872_v10, 16 }
  0x52   : > { %v3748_v52 = vsel %vm986_vm5, 1.0, %v3241_v1 }
  0x53   : > { %2969 = vmatmul.mubr.msk.bf16.gmra.mrb[24].mxu1 %vm412_vm1, %v390_v32  ;;  %v2352_v32 = vsel %vm2314_vm2, %v2350_v24, %v2351_v26 }
  0x54   : > { %2972 = vmatprep.mubr.msk.bf16.mxu1 %vm3242_vm0, %v3241_v1 }
  0x58   : > { %2917 = vmatmul.mubr.msk.bf16.gmra.mrb[28].mxu0 %vm412_vm1, %v377_v33  ;;  %v2354_v33 = vsel %vm2314_vm2, %v2351_v26, %v2353_v29  ;;  %v3730_v26 = vsel %vm927_vm4, 1.0, %v3241_v1  ;;  %v3732_v29 = vrot.slane %v1258_v11, %v1295_v13 }
  0x59   : > { %2920 = vmatprep.mubr.msk.bf16.mxu0 %vm3242_vm0, %v3241_v1 }
  0x5b   : > { %2973 = vmatmul.mubr.msk.bf16.gmra.mrb[28].mxu1 %vm412_vm1, %v391_v40  ;;  %v3138_v40 = vpack.i.bf16 %v2354_v33, %v2352_v32 }
  0x5c   : > { %2976 = vmatprep.mubr.msk.bf16.mxu1 %vm3242_vm0, %v3241_v1 }
  0x5d   : > { %3139 = vrot.lane.b32.xlu0 %v3138_v40, %s3243_s22 }
  0x60   : > { %2921 = vmatmul.mubr.msk.bf16.gmra.mrb[32].mxu0 %vm412_vm1, %v378_v42  ;;  %v2375_v42 = vrot.slane %v3541_v27, 1 }
  0x61   : > { %2924 = vmatprep.mubr.msk.bf16.mxu0 %vm3242_vm0, %v3241_v1 }
  0x63   : > { %2977 = vmatmul.mubr.msk.bf16.gmra.mrb[32].mxu1 %vm412_vm1, %v392_v45  ;;  %v2376_v45 = vrot.slane %v3554_v30, 1  ;;  %v2385_v30 = vrot.slane %v3589_v44, 1 }
  0x64   : > { %2980 = vmatprep.mubr.msk.bf16.mxu1 %vm3242_vm0, %v3241_v1 }
  0x65   : > { %v2377_v49 = vsel %vm2314_vm2, %v2375_v42, %v2376_v45 }
  0x68   : > { %2925 = vmatmul.mubr.msk.bf16.gmra.mrb[36].mxu0 %vm412_vm1, %v379_v46  ;;  %v2378_v46 = vrot.slane %v3557_v31, 1  ;;  %v2386_v31 = vrot.slane %v3602_v47, 1 }
  0x69   : > { %2928 = vmatprep.mubr.msk.bf16.mxu0 %vm3242_vm0, %v3241_v1 }
  0x6a   : > { %v2379_v50 = vsel %vm2314_vm2, %v2376_v45, %v2378_v46  ;;  %v2389_v34 = vsel %vm2314_vm2, %v2386_v31, %v2388_v54  ;;  %v1260_v46 = vld [vmem:[%s5000_s3 + $0x8] sm:$0x7] }
  0x6b   : > { %2981 = vmatmul.mubr.msk.bf16.gmra.mrb[36].mxu1 %vm412_vm1, %v393_v55  ;;  %v3113_v51 = vpack.i.bf16 %v2379_v50, %v2377_v49  ;;  %v2387_v55 = vsel %vm2314_vm2, %v2385_v30, %v2386_v31  ;;  %v3740_v49 = vrot.slane %v1258_v11, %v1395_v16  ;;  %v3742_v50 = vrot.slane %v1258_v11, %v1495_v17 }
  0x6c   : > { %2984 = vmatprep.mubr.msk.bf16.mxu1 %vm3242_vm0, %v3241_v1  ;;  %v3133_v37 = vpack.i.bf16 %v2389_v34, %v2387_v55  ;;  %v3752_v30 = vrot.slane %v1259_v23, %v1395_v16  ;;  %v3754_v31 = vrot.slane %v1259_v23, %v1495_v17  ;;  %v3758_v55 = vrot.slane %v1260_v46, %v1295_v13 }
  0x6d   : > { %3114 = vrot.lane.b32.xlu1 %v3113_v51, %s3243_s22  ;;  %v3760_v34 = vrot.slane %v1260_v46, %v1395_v16 }
  0x70   : > { %2929 = vmatmul.mubr.msk.bf16.gmra.mrb[40].mxu0 %vm412_vm1, %v380_v35  ;;  %v2393_v35 = vrot.slane %v3646_v5, 1 }
  0x71   : > { %2932 = vmatprep.mubr.msk.bf16.mxu0 %vm3242_vm0, %v3241_v1 }
  0x72   : > { %v2394_v44 = vsel %vm2314_vm2, %v2391_v56, %v2393_v35 }
  0x73   : > { %2985 = vmatmul.mubr.msk.bf16.gmra.mrb[40].mxu1 %vm412_vm1, %v394_v3  ;;  %v3143_v47 = vpack.i.bf16 %v2394_v44, %v2392_v58 }
  0x74   : > { %2988 = vmatprep.mubr.msk.bf16.mxu1 %vm3242_vm0, %v3241_v1 }
  0x78   : > { %2933 = vmatmul.mubr.msk.bf16.gmra.mrb[44].mxu0 %vm412_vm1, %v381_v4 }
  0x79   : > { %2936 = vmatprep.mubr.msk.bf16.mxu0 %vm3242_vm0, %v3241_v1 }
  0x7b   : > { %2989 = vmatmul.mubr.msk.bf16.gmra.mrb[44].mxu1 %vm412_vm1, %v395_v18 }
  0x7c   : > { %2992 = vmatprep.mubr.msk.bf16.mxu1 %vm3242_vm0, %v3241_v1 }
  0x80   : > { %2937 = vmatmul.mubr.msk.bf16.gmra.mrb[48].mxu0 %vm412_vm1, %v382_v8 }
  0x81   : > { %2940 = vmatprep.mubr.msk.bf16.mxu0 %vm3242_vm0, %v3241_v1 }
  0x83   : > { %2993 = vmatmul.mubr.msk.bf16.gmra.mrb[48].mxu1 %vm412_vm1, %v396_v28 }
  0x88   : > { %2941 = vmatmul.mubr.msk.bf16.gmra.mrb[52].mxu0 %vm412_vm1, %v383_v41  ;;  %v2384_v41 = vsel %vm2314_vm2, %v2381_v53, %v2383_v38  ;;  %v3750_v53 = vrot.slane %v1259_v23, %v1295_v13 }
  0x89   : > { %v3123_v27 = vpack.i.bf16 %v2384_v41, %v2382_v39 }
  0x8b   : > { %3124 = vrot.lane.b32.xlu1 %v3123_v27, %s3243_s22 }
  0x8f   : > { %3134 = vrot.lane.b32.xlu1 %v3133_v37, %s3243_s22  ;;  %v3762_v37 = vrot.slane %v1260_v46, %v1495_v17 }
  0x93   : > { %3144 = vrot.lane.b32.xlu1 %v3143_v47, %s3243_s22  ;;  %s298_s22 = sand.u32 1, %s3223_s25  }
  0x94   : > { %s2765_s23 = sshll.u32 %s298_s22, 5  ;;  %s4951_s27 = scalar_lea.sflag [#allocation4], %s298_s22 }
  0x95   : > { %s300_s30 = scalar_lea.vmem [#allocation3], %s2765_s23 }
  0x96   : > { %v3704_v48 = vpop.permute.xlu0 %3069  ;;  %s2673_s8 = sshll.u32 %s300_s30, 4  ;;  %s4944_s8 = int_to_ptr.vmem [resolvable:$true] %s2673_s8 }
  0x97   : > { %v3756_v54 = vpop.permute.xlu1 %3079  ;;  %s3161_s16 = scalar_lea.vmem %s4944_s8, 512  ;;  %p3168_p1 = scmp.lt.s32.totalorder %s4944_s8, %s3166_s19 }
  0x98   : > { %p3162_p12 = scmp.ne.s32.totalorder %s4944_s8, %s3161_s16  ;;  %p3169_p2 = scmp.lt.s32.totalorder %s3167_s20, %s3161_s16 }
  0x9a   : > { %p3163_p13 = pnand %p3162_p12, %p3328_p4  ;;  %p3170_p3 = por %p3169_p2, %p3168_p1 }
  0x9b   : > { %v3706_v59 = vpop.permute.xlu0 %3074 }
  0x9c   : > { %5017 = vst [vmem:[#allocation6_spill] sm:$0xff] %v3706_v59  ;;  %p3164_p0 = pneg %p3163_p13 }
  0x9e   : > { %p3171_p5 = pnand %p3170_p3, %p3164_p0 }
  0x9f   : > { %v3715_v5 = vpop.permute.xlu0 %3089 }
  0xa3   : > { %v3720_v18 = vpop.permute.xlu0 %3099 }
  0xa7   : > { %v3744_v51 = vpop.permute.xlu0 %3109 }
  0xab   : > { %v3767_v47 = vpop.permute.xlu0 %3119 }
  0xf3   : > { %v528_v57 = vpop.f32.mrb[0].mxu0 }
  0xf4   : > { %v529_v61 = vadd.f32 %v3711_v60, %v528_v57  ;;  %v2890_v63 = vpop.f32.mrb[1].mxu0 }
  0xf5   : > { %v531_v0 = vpop.f32.mrb[2].mxu0 }
  0xf6   : > { %v743_v3 = vmax.f32 %v529_v61, 0.0  ;;  %v532_v62 = vadd.f32 %v3711_v60, %v531_v0  ;;  %v2891_v4 = vpop.f32.mrb[3].mxu0  ;;  %v640_v19 = vpop.f32.mrb[0].mxu1 }
  0xf7   : > { %v641_v21 = vadd.f32 %v3711_v60, %v640_v19  ;;  %v2946_v8 = vpop.f32.mrb[1].mxu1 }
  0xf8   : > { %v797_v6 = vmin.f32 %v743_v3, 6.0  ;;  %v744_v7 = vmax.f32 %v532_v62, 0.0  ;;  %v643_v25 = vpop.f32.mrb[2].mxu1 }
  0xf9   : > { %v771_v28 = vmax.f32 %v641_v21, 0.0  ;;  %v644_v32 = vadd.f32 %v3711_v60, %v643_v25  ;;  %v2947_v33 = vpop.f32.mrb[3].mxu1 }
  0xfa   : > { %v1149_v14 = vmul.f32 0.0, %v797_v6  ;;  %v798_v15 = vmin.f32 %v744_v7, 6.0 }
  0xfb   : > { %v536_v20 = vpop.f32.mrb[4].mxu0  ;;  %v825_v38 = vmin.f32 %v771_v28, 6.0  ;;  %v772_v39 = vmax.f32 %v644_v32, 0.0  ;;  %v3788_v32 = vpop.permute.xlu0 %3129 }
  0xfc   : > { %1204 = vst.msk [vmem:[#allocation2] sm:$0xff] %vm1203_vm3, %v1149_v14  ;;  %v1150_v9 = vmul.f32 0.0, %v798_v15  ;;  %v537_v22 = vadd.f32 %v3711_v60, %v536_v20  ;;  %v2894_v12 = vpop.f32.mrb[5].mxu0  ;;  %5018 = vst [vmem:[#allocation7_spill] sm:$0xff] %v3788_v32 }
  0xfd   : > { %v539_v24 = vpop.f32.mrb[6].mxu0  ;;  %1232 = vst.msk [vmem:[#allocation2 + $0xe0] sm:$0xff] %vm1203_vm3, %v825_v38  ;;  %v826_v1 = vmin.f32 %v772_v39, 6.0  ;;  %v3792_v38 = vpop.permute.xlu1 %3084 }
  0xfe   : > { %1205 = vst.msk [vmem:[#allocation2 + $0x8] sm:$0xff] %vm1203_vm3, %v1150_v9  ;;  %v745_v40 = vmax.f32 %v537_v22, 0.0  ;;  %v540_v42 = vadd.f32 %v3711_v60, %v539_v24  ;;  %v2895_v45 = vpop.f32.mrb[7].mxu0  ;;  %v648_v44 = vpop.f32.mrb[4].mxu1  ;;  %5019 = vst [vmem:[#allocation8_spill] sm:$0xff] %v3792_v38 }
  0xff   : > { %v1178_v63 = vmul.f32 %v3748_v52, %v826_v1  ;;  %v649_v0 = vadd.f32 %v3711_v60, %v648_v44  ;;  %v2950_v2 = vpop.f32.mrb[5].mxu1 }
 0x100   : > { %v799_v41 = vmin.f32 %v745_v40, 6.0  ;;  %v746_v27 = vmax.f32 %v540_v42, 0.0  ;;  %v651_v10 = vpop.f32.mrb[6].mxu1 }
 0x101   : > { %1233 = vst.msk [vmem:[#allocation2 + $0xe8] sm:$0xff] %vm1203_vm3, %v1178_v63  ;;  %v773_v17 = vmax.f32 %v649_v0, 0.0  ;;  %v652_v19 = vadd.f32 %v3711_v60, %v651_v10  ;;  %v2951_v20 = vpop.f32.mrb[7].mxu1 }
 0x102   : > { %v1151_v43 = vmul.f32 0.0, %v799_v41  ;;  %v800_v56 = vmin.f32 %v746_v27, 6.0 }
 0x103   : > { %v544_v36 = vpop.f32.mrb[8].mxu0  ;;  %v1261_v13 = vld [vmem:[#allocation2] sm:$0xff]  ;;  %v827_v25 = vmin.f32 %v773_v17, 6.0  ;;  %v774_v24 = vmax.f32 %v652_v19, 0.0 }
 0x104   : > { %1206 = vst.msk [vmem:[#allocation2 + $0x10] sm:$0xff] %vm1203_vm3, %v1151_v43  ;;  %v1152_v3 = vmul.f32 %v3730_v26, %v800_v56  ;;  %v545_v62 = vadd.f32 %v3711_v60, %v544_v36  ;;  %v2898_v4 = vpop.f32.mrb[9].mxu0  ;;  %v1297_v42 = vmul.f32 %v3732_v29, %v1261_v13  ;;  %v1280_v43 = vld [vmem:[#allocation2 + $0xe0] sm:$0xff] }
 0x105   : > { %v547_v11 = vpop.f32.mrb[10].mxu0  ;;  %v1361_v14 = vld [vmem:[#allocation2 + $0x1] sm:$0xff]  ;;  %v1179_v39 = vmul.f32 %v3730_v26, %v827_v25  ;;  %v828_v41 = vmin.f32 %v774_v24, 6.0 }
 0x106   : > { %1207 = vst.msk [vmem:[#allocation2 + $0x18] sm:$0xff] %vm1203_vm3, %v1152_v3  ;;  %v747_v21 = vmax.f32 %v545_v62, 0.0  ;;  %v548_v8 = vadd.f32 %v3711_v60, %v547_v11  ;;  %v2899_v9 = vpop.f32.mrb[11].mxu0  ;;  %v1397_v22 = vmul.f32 %v3740_v49, %v1361_v14  ;;  %v1461_v45 = vld [vmem:[#allocation2 + $0x2] sm:$0xff]  ;;  %v656_v63 = vpop.f32.mrb[8].mxu1 }
 0x107   : > { %v1262_v44 = vld [vmem:[#allocation2 + $0x8] sm:$0xff]  ;;  %v1497_v4 = vmul.f32 %v3742_v50, %v1461_v45  ;;  %1234 = vst.msk [vmem:[#allocation2 + $0xf0] sm:$0xff] %vm1203_vm3, %v1179_v39  ;;  %1235 = vst.msk [vmem:[#allocation2 + $0xf8] sm:$0xff] %vm1203_vm3, %v828_v41  ;;  %v657_v10 = vadd.f32 %v3711_v60, %v656_v63  ;;  %v2954_v11 = vpop.f32.mrb[9].mxu1  ;;  %v1316_v9 = vmul.f32 %v3732_v29, %v1280_v43 }
 0x108   : > { %v801_v33 = vmin.f32 %v747_v21, 6.0  ;;  %v748_v40 = vmax.f32 %v548_v8, 0.0  ;;  %v1429_v36 = vadd.f32 %v1397_v22, %v1297_v42  ;;  %v659_v8 = vpop.f32.mrb[10].mxu1  ;;  %v1380_v22 = vld [vmem:[#allocation2 + $0xe1] sm:$0xff]  ;;  %v1298_v24 = vmul.f32 %v3732_v29, %v1262_v44 }
 0x109   : > { %v660_v42 = vadd.f32 %v3711_v60, %v659_v8  ;;  %v2955_v45 = vpop.f32.mrb[11].mxu1  ;;  %v1416_v39 = vmul.f32 %v3740_v49, %v1380_v22  ;;  %v1480_v41 = vld [vmem:[#allocation2 + $0xe2] sm:$0xff] }
 0x10a   : > { %1208 = vst.msk [vmem:[#allocation2 + $0x20] sm:$0xff] %vm1203_vm3, %v801_v33  ;;  %v802_v56 = vmin.f32 %v748_v40, 6.0  ;;  %v775_v40 = vmax.f32 %v657_v10, 0.0  ;;  %v1529_v11 = vadd.f32 %v1497_v4, %v1429_v36  ;;  %v1516_v0 = vmul.f32 %v3742_v50, %v1480_v41 }
 0x10b   : > { %v552_v3 = vpop.f32.mrb[12].mxu0  ;;  %v1362_v62 = vld [vmem:[#allocation2 + $0x9] sm:$0xff]  ;;  %v776_v8 = vmax.f32 %v660_v42, 0.0  ;;  %v1448_v13 = vadd.f32 %v1416_v39, %v1316_v9  ;;  %v3823_v4 = vmul.f32 %v3750_v53, %v1280_v43 }
 0x10c   : > { %v1154_v17 = vmul.f32 %v3748_v52, %v802_v56  ;;  %v553_v19 = vadd.f32 %v3711_v60, %v552_v3  ;;  %v2902_v20 = vpop.f32.mrb[13].mxu0  ;;  %v1398_v21 = vmul.f32 %v3740_v49, %v1362_v62  ;;  %v1462_v62 = vld [vmem:[#allocation2 + $0xa] sm:$0xff]  ;;  %v829_v6 = vmin.f32 %v775_v40, 6.0 }
 0x10d   : > { %v555_v25 = vpop.f32.mrb[14].mxu0  ;;  %v1562_v33 = vld [vmem:[#allocation2 + $0x18] sm:$0xff]  ;;  %v3816_v20 = vmul.f32 %v3758_v55, %v1280_v43  ;;  %v830_v36 = vmin.f32 %v776_v8, 6.0  ;;  %5021 = vst [vmem:[#allocation10_spill] sm:$0xff] %v3823_v4  ;;  %v3835_v14 = vadd.f32 %v1516_v0, %v1448_v13 }
 0x10e   : > { %1209 = vst.msk [vmem:[#allocation2 + $0x28] sm:$0xff] %vm1203_vm3, %v1154_v17  ;;  %v749_v56 = vmax.f32 %v553_v19, 0.0  ;;  %v556_v63 = vadd.f32 %v3711_v60, %v555_v25  ;;  %v2903_v3 = vpop.f32.mrb[15].mxu0  ;;  %v1430_v44 = vadd.f32 %v1398_v21, %v1298_v24  ;;  %v1598_v10 = vmul.f32 %v3750_v53, %v1562_v33  ;;  %v664_v39 = vpop.f32.mrb[12].mxu1  ;;  %v1580_v27 = vld [vmem:[#allocation2 + $0xf0] sm:$0xff] }
 0x10f   : > { %5020 = vst [vmem:[#allocation9_spill] sm:$0xff] %v3816_v20  ;;  %v1498_v17 = vmul.f32 %v3742_v50, %v1462_v62  ;;  %v1181_v3 = vmul.f32 %v3748_v52, %v829_v6  ;;  %v1299_v62 = vmul.f32 %v1562_v33, %v3732_v29  ;;  %v2958_v43 = vpop.f32.mrb[13].mxu1  ;;  %v3851_v1 = vmul.f32 %v3750_v53, %v1580_v27 }
 0x110   : > { %v803_v45 = vmin.f32 %v749_v56, 6.0  ;;  %v750_v7 = vmax.f32 %v556_v63, 0.0  ;;  %v1630_v63 = vadd.f32 %v1598_v10, %v1529_v11  ;;  %v667_v2 = vpop.f32.mrb[14].mxu1  ;;  %v3838_v11 = vmul.f32 %v3760_v34, %v1380_v22 }
 0x111   : > { %v1563_v19 = vld [vmem:[#allocation2 + $0x20] sm:$0xff]  ;;  %v1530_v56 = vadd.f32 %v1498_v17, %v1430_v44  ;;  %1236 = vst.msk [vmem:[#allocation2 + $0x100] sm:$0xff] %vm1203_vm3, %v1181_v3  ;;  %v668_v3 = vadd.f32 %v3711_v60, %v667_v2 }
 0x112   : > { %v1662_v25 = vld [vmem:[#allocation2 + $0x19] sm:$0xff]  ;;  %v1155_v21 = vmul.f32 %v3730_v26, %v803_v45  ;;  %v804_v24 = vmin.f32 %v750_v7, 6.0  ;;  %v1599_v40 = vmul.f32 %v3750_v53, %v1563_v19  ;;  %v1182_v45 = vmul.f32 %v3730_v26, %v830_v36  ;;  %5022 = vst [vmem:[#allocation11_spill] sm:$0xff] %v3838_v11 }
 0x113   : > { %v1698_v42 = vmul.f32 %v3752_v30, %v1662_v25  ;;  %v1762_v9 = vld [vmem:[#allocation2 + $0x1a] sm:$0xff]  ;;  %v560_v41 = vpop.f32.mrb[16].mxu0  ;;  %v1399_v6 = vmul.f32 %v1662_v25, %v3740_v49  ;;  %v665_v25 = vadd.f32 %v3711_v60, %v664_v39  ;;  %v1300_v22 = vmul.f32 %v1563_v19, %v3732_v29 }
 0x114   : > { %1210 = vst.msk [vmem:[#allocation2 + $0x30] sm:$0xff] %vm1203_vm3, %v1155_v21  ;;  %1211 = vst.msk [vmem:[#allocation2 + $0x38] sm:$0xff] %vm1203_vm3, %v804_v24  ;;  %v561_v7 = vadd.f32 %v3711_v60, %v560_v41  ;;  %v2906_v8 = vpop.f32.mrb[17].mxu0  ;;  %v1798_v17 = vmul.f32 %v3754_v31, %v1762_v9  ;;  %v2959_v21 = vpop.f32.mrb[15].mxu1  ;;  %v1631_v43 = vadd.f32 %v1599_v40, %v1530_v56 }
 0x115   : > { %v563_v33 = vpop.f32.mrb[18].mxu0  ;;  %v1663_v44 = vld [vmem:[#allocation2 + $0x21] sm:$0xff]  ;;  %v1730_v10 = vadd.f32 %v1698_v42, %v1630_v63  ;;  %1237 = vst.msk [vmem:[#allocation2 + $0x108] sm:$0xff] %vm1203_vm3, %v1182_v45  ;;  %v1431_v63 = vadd.f32 %v1399_v6, %v1299_v62  ;;  %v1499_v39 = vmul.f32 %v1762_v9, %v3742_v50 }
 0x116   : > { %v751_v24 = vmax.f32 %v561_v7, 0.0  ;;  %v564_v41 = vadd.f32 %v3711_v60, %v563_v33  ;;  %v2907_v36 = vpop.f32.mrb[19].mxu0  ;;  %v1699_v0 = vmul.f32 %v3752_v30, %v1663_v44  ;;  %v1763_v13 = vld [vmem:[#allocation2 + $0x22] sm:$0xff]  ;;  %v1400_v42 = vmul.f32 %v1663_v44, %v3740_v49  ;;  %v1581_v33 = vld [vmem:[#allocation2 + $0xf8] sm:$0xff]  ;;  %v672_v9 = vpop.f32.mrb[16].mxu1 }
 0x117   : > { %v777_v7 = vmax.f32 %v665_v25, 0.0  ;;  %v1799_v40 = vmul.f32 %v3754_v31, %v1763_v13  ;;  %v1830_v56 = vadd.f32 %v1798_v17, %v1730_v10  ;;  %v778_v36 = vmax.f32 %v668_v3, 0.0  ;;  %v1680_v44 = vld [vmem:[#allocation2 + $0xf1] sm:$0xff]  ;;  %v2962_v46 = vpop.f32.mrb[17].mxu1 }
 0x118   : > { %v805_v8 = vmin.f32 %v751_v24, 6.0  ;;  %v752_v2 = vmax.f32 %v564_v41, 0.0  ;;  %v1731_v21 = vadd.f32 %v1699_v0, %v1631_v43  ;;  %v1500_v62 = vmul.f32 %v1763_v13, %v3742_v50 }
 0x119   : > { %v831_v6 = vmin.f32 %v777_v7, 6.0  ;;  %v1432_v0 = vadd.f32 %v1400_v42, %v1300_v22  ;;  %v1531_v28 = vadd.f32 %v1499_v39, %v1431_v63  ;;  %v1617_v10 = vmul.f32 %v3750_v53, %v1581_v33  ;;  %v3864_v22 = vpop.f32.mrb[18].mxu1 }
 0x11a   : > { %v1157_v19 = vmul.f32 %v3748_v52, %v805_v8  ;;  %v806_v45 = vmin.f32 %v752_v2, 6.0  ;;  %v3857_v27 = vmul.f32 %v3752_v30, %v1680_v44  ;;  %v1831_v8 = vadd.f32 %v1799_v40, %v1731_v21 }
 0x11b   : > { %v568_v24 = vpop.f32.mrb[20].mxu0  ;;  %v1863_v41 = vld [vmem:[#allocation2 + $0x30] sm:$0xff]  ;;  %v1864_v25 = vld [vmem:[#allocation2 + $0x38] sm:$0xff]  ;;  %1238 = vst.msk [vmem:[#allocation2 + $0x110] sm:$0xff] %vm1203_vm3, %v831_v6  ;;  %v832_v33 = vmin.f32 %v778_v36, 6.0  ;;  %v3873_v12 = vadd.f32 %v3711_v60, %v672_v9  ;;  %v3876_v23 = vadd.f32 %v1617_v10, %v3835_v14 }
 0x11c   : > { %v1963_v43 = vld [vmem:[#allocation2 + $0x31] sm:$0xff]  ;;  %1212 = vst.msk [vmem:[#allocation2 + $0x40] sm:$0xff] %vm1203_vm3, %v1157_v19  ;;  %v1158_v17 = vmul.f32 %v3730_v26, %v806_v45  ;;  %v569_v3 = vadd.f32 %v3711_v60, %v568_v24  ;;  %v2910_v13 = vpop.f32.mrb[21].mxu0  ;;  %v1899_v2 = vmul.f32 %v3758_v55, %v1863_v41  ;;  %v1900_v42 = vmul.f32 %v3758_v55, %v1864_v25  ;;  %v2963_v19 = vpop.f32.mrb[19].mxu1 }
 0x11d   : > { %v571_v46 = vpop.f32.mrb[22].mxu0  ;;  %v2063_v63 = vld [vmem:[#allocation2 + $0x32] sm:$0xff]  ;;  %v1600_v39 = vmul.f32 %v1863_v41, %v3750_v53  ;;  %v1601_v7 = vmul.f32 %v1864_v25, %v3750_v53  ;;  %v1999_v6 = vmul.f32 %v3760_v34, %v1963_v43  ;;  %v1532_v24 = vadd.f32 %v1500_v62, %v1432_v0  ;;  %v3885_v62 = vld [vmem:[%s5001_s4] ss:$0 sm:$0xff] }
 0x11e   : > { %1213 = vst.msk [vmem:[#allocation2 + $0x48] sm:$0xff] %vm1203_vm3, %v1158_v17  ;;  %v753_v45 = vmax.f32 %v569_v3, 0.0  ;;  %v572_v21 = vadd.f32 %v3711_v60, %v571_v46  ;;  %v2911_v40 = vpop.f32.mrb[23].mxu0  ;;  %v1931_v44 = vadd.f32 %v1899_v2, %v1830_v56  ;;  %v2099_v17 = vmul.f32 %v3762_v37, %v2063_v63  ;;  %v3889_v10 = vpop.f32.mrb[20].mxu1 }
 0x11f   : > { %v1632_v13 = vadd.f32 %v1600_v39, %v1531_v28  ;;  %v1932_v3 = vadd.f32 %v1900_v42, %v1831_v8  ;;  %v1633_v16 = vadd.f32 %v1601_v7, %v1532_v24  ;;  %v1700_v46 = vmul.f32 %v1963_v43, %v3752_v30 }
 0x120   : > { %v807_v15 = vmin.f32 %v753_v45, 6.0  ;;  %v754_v36 = vmax.f32 %v572_v21, 0.0  ;;  %v2031_v19 = vadd.f32 %v1999_v6, %v1931_v44  ;;  %v1800_v56 = vmul.f32 %v2063_v63, %v3754_v31  ;;  %v2966_v21 = vpop.f32.mrb[21].mxu1 }
 0x121   : > { %v1301_v9 = vmul.f32 %v1863_v41, %v3732_v29  ;;  %v1184_v0 = vmul.f32 %v3748_v52, %v832_v33  ;;  %v1732_v39 = vadd.f32 %v1700_v46, %v1632_v13  ;;  %v1302_v7 = vmul.f32 %v1864_v25, %v3732_v29  ;;  %v3899_v24 = vpop.f32.mrb[22].mxu1 }
 0x122   : > { %1214 = vst.msk [vmem:[#allocation2 + $0x50] sm:$0xff] %vm1203_vm3, %v807_v15  ;;  %v808_v28 = vmin.f32 %v754_v36, 6.0  ;;  %v2131_v14 = vadd.f32 %v2099_v17, %v2031_v19  ;;  %v1401_v15 = vmul.f32 %v1963_v43, %v3740_v49  ;;  %v1501_v45 = vmul.f32 %v2063_v63, %v3742_v50  ;;  %v2967_v17 = vpop.f32.mrb[23].mxu1 }
 0x123   : > { %v576_v8 = vpop.f32.mrb[24].mxu0  ;;  %v1964_v2 = vld [vmem:[#allocation2 + $0x39] sm:$0xff]  ;;  %1239 = vst.msk [vmem:[#allocation2 + $0x118] sm:$0xff] %vm1203_vm3, %v1184_v0 }
 0x124   : > { %v2064_v42 = vld [vmem:[#allocation2 + $0x3a] sm:$0xff]  ;;  %v1160_v40 = vmul.f32 %v3748_v52, %v808_v28  ;;  %v577_v44 = vadd.f32 %v3711_v60, %v576_v8  ;;  %v2914_v41 = vpop.f32.mrb[25].mxu0  ;;  %v2000_v33 = vmul.f32 %v3760_v34, %v1964_v2  ;;  %v2170_v43 = vadd.f32 %v3885_v62, %v2131_v14 }
 0x125   : > { %v579_v13 = vpop.f32.mrb[26].mxu0  ;;  %v2100_v25 = vmul.f32 %v3762_v37, %v2064_v42  ;;  %v1701_v63 = vmul.f32 %v1964_v2, %v3752_v30  ;;  %v3904_v36 = vld [vmem:[#allocation2 + $0x48] sm:$0xff]  ;;  %v1402_v19 = vmul.f32 %v1964_v2, %v3740_v49  ;;  %v1832_v14 = vadd.f32 %v1800_v56, %v1732_v39 }
 0x126   : > { %1215 = vst.msk [vmem:[#allocation2 + $0x58] sm:$0xff] %vm1203_vm3, %v1160_v40  ;;  %v755_v46 = vmax.f32 %v577_v44, 0.0  ;;  %v580_v28 = vadd.f32 %v3711_v60, %v579_v13  ;;  %v2915_v0 = vpop.f32.mrb[27].mxu0  ;;  %v2032_v8 = vadd.f32 %v2000_v33, %v1932_v3  ;;  %v1901_v21 = vmul.f32 %v3758_v55, %v3904_v36 }
 0x127   : > { %v2202_v41 = vmax.f32 %v2170_v43, 0.0  ;;  %v1733_v6 = vadd.f32 %v1701_v63, %v1633_v16  ;;  %v1433_v57 = vadd.f32 %v1401_v15, %v1301_v9  ;;  %v1434_v59 = vadd.f32 %v1402_v19, %v1302_v7  ;;  %v3927_v15 = vpop.f32.mrb[24].mxu1 }
 0x128   : > { %v809_v61 = vmin.f32 %v755_v46, 6.0  ;;  %v756_v35 = vmax.f32 %v580_v28, 0.0  ;;  %v2132_v58 = vadd.f32 %v2100_v25, %v2032_v8  ;;  %v1801_v2 = vmul.f32 %v2064_v42, %v3754_v31 }
 0x129   : > { %v3912_v17 = vld [vmem:[#allocation2 + $0x50] sm:$0xff]  ;;  %v1933_v40 = vadd.f32 %v1901_v21, %v1832_v14  ;;  %v1502_v3 = vmul.f32 %v2064_v42, %v3742_v50  ;;  %v3919_v33 = vadd.f32 %v3711_v60, %v3864_v22  ;;  %v2234_v13 = vmin.f32 %v2202_v41, 6.0 }
 0x12a   : > { %v3914_v44 = vld [vmem:[#allocation2 + $0x49] sm:$0xff]  ;;  %v1161_v16 = vmul.f32 %v3730_v26, %v809_v61  ;;  %v810_v56 = vmin.f32 %v756_v35, 6.0  ;;  %v2171_v9 = vadd.f32 %v3885_v62, %v2132_v58  ;;  %v1902_v39 = vmul.f32 %v3758_v55, %v3912_v17  ;;  %v2970_v61 = vpop.f32.mrb[25].mxu1 }
 0x12b   : > { %v3925_v7 = vld [vmem:[#allocation2 + $0x4a] sm:$0xff]  ;;  %v584_v25 = vpop.f32.mrb[28].mxu0  ;;  %v1833_v43 = vadd.f32 %v1801_v2, %v1733_v6  ;;  %v2001_v42 = vmul.f32 %v3760_v34, %v3914_v44  ;;  %v1602_v22 = vmul.f32 %v3904_v36, %v3750_v53  ;;  %v1533_v63 = vadd.f32 %v1501_v45, %v1433_v57  ;;  %v3938_v6 = vpop.f32.mrb[26].mxu1 }
 0x12c   : > { %1216 = vst.msk [vmem:[#allocation2 + $0x60] sm:$0xff] %vm1203_vm3, %v1161_v16  ;;  %1217 = vst.msk [vmem:[#allocation2 + $0x68] sm:$0xff] %vm1203_vm3, %v810_v56  ;;  %v585_v35 = vadd.f32 %v3711_v60, %v584_v25  ;;  %v2918_v58 = vpop.f32.mrb[29].mxu0  ;;  %v1534_v19 = vadd.f32 %v1502_v3, %v1434_v59  ;;  %v1603_v46 = vmul.f32 %v3912_v17, %v3750_v53  ;;  %v2203_v28 = vmax.f32 %v2171_v9, 0.0  ;;  %v2971_v16 = vpop.f32.mrb[27].mxu1 }
 0x12d   : > { %v587_v0 = vpop.f32.mrb[30].mxu0  ;;  %v1966_v8 = vld [vmem:[#allocation2 + $0x51] sm:$0xff]  ;;  %v2033_v21 = vadd.f32 %v2001_v42, %v1933_v40  ;;  %v2101_v14 = vmul.f32 %v3762_v37, %v3925_v7  ;;  %v1702_v2 = vmul.f32 %v3914_v44, %v3752_v30  ;;  %v1934_v3 = vadd.f32 %v1902_v39, %v1833_v43 }
 0x12e   : > { %v3940_v41 = vld [vmem:[#allocation2 + $0x52] sm:$0xff]  ;;  %v757_v57 = vmax.f32 %v585_v35, 0.0  ;;  %v588_v59 = vadd.f32 %v3711_v60, %v587_v0  ;;  %v2919_v45 = vpop.f32.mrb[31].mxu0  ;;  %v2002_v56 = vmul.f32 %v3760_v34, %v1966_v8  ;;  %v1634_v25 = vadd.f32 %v1602_v22, %v1533_v63 }
 0x12f   : > { %v2133_v9 = vadd.f32 %v2101_v14, %v2033_v21  ;;  %v1635_v61 = vadd.f32 %v1603_v46, %v1534_v19  ;;  %v1703_v40 = vmul.f32 %v1966_v8, %v3752_v30  ;;  %v2102_v32 = vmul.f32 %v3762_v37, %v3940_v41  ;;  %v3959_v46 = vpop.f32.mrb[28].mxu1 }
 0x130   : > { %v811_v42 = vmin.f32 %v757_v57, 6.0  ;;  %v758_v58 = vmax.f32 %v588_v59, 0.0  ;;  %v2034_v4 = vadd.f32 %v2002_v56, %v1934_v3  ;;  %v1734_v35 = vadd.f32 %v1702_v2, %v1634_v25 }
 0x131   : > { %v2172_v16 = vadd.f32 %v3885_v62, %v2133_v9  ;;  %v1735_v38 = vadd.f32 %v1703_v40, %v1635_v61  ;;  %v3954_v39 = vadd.f32 %v3711_v60, %v3889_v10  ;;  %v1802_v19 = vmul.f32 %v3925_v7, %v3754_v31 }
 0x132   : > { %v1163_v43 = vmul.f32 %v3748_v52, %v811_v42  ;;  %v812_v22 = vmin.f32 %v758_v58, 6.0  ;;  %v2134_v63 = vadd.f32 %v2102_v32, %v2034_v4  ;;  %v3961_v0 = vmin.f32 %v2203_v28, 6.0  ;;  %v2974_v4 = vpop.f32.mrb[29].mxu1 }
 0x133   : > { %v5023_v21 = vunpack.i.l.bf16 %v3704_v48  ;;  %v2204_v2 = vmax.f32 %v2172_v16, 0.0  ;;  %v592_v57 = vpop.f32.mrb[32].mxu0  ;;  %v1803_v10 = vmul.f32 %v3940_v41, %v3754_v31  ;;  %v3970_v59 = vld [vmem:[#allocation2 + $0x60] sm:$0xff]  ;;  %v1834_v56 = vadd.f32 %v1802_v19, %v1734_v35  ;;  %v3981_v25 = vpop.f32.mrb[30].mxu1 }
 0x134   : > { %v3972_v32 = vld [vmem:[#allocation2 + $0x61] sm:$0xff]  ;;  %1218 = vst.msk [vmem:[#allocation2 + $0x70] sm:$0xff] %vm1203_vm3, %v1163_v43  ;;  %v1164_v28 = vmul.f32 %v3730_v26, %v812_v22  ;;  %v593_v45 = vadd.f32 %v3711_v60, %v592_v57  ;;  %v2922_v3 = vpop.f32.mrb[33].mxu0  ;;  %v1903_v9 = vmul.f32 %v3758_v55, %v3970_v59  ;;  %v3984_v61 = vadd.f32 %v3885_v62, %v2134_v63  ;;  %v2975_v43 = vpop.f32.mrb[31].mxu1 }
 0x135   : > { %v3966_v14 = vsel %vm1203_vm3, %v2234_v13, %v5023_v21  ;;  %v3977_v13 = vld [vmem:[#allocation2 + $0x68] sm:$0xff]  ;;  %v595_v40 = vpop.f32.mrb[34].mxu0  ;;  %v1835_v42 = vadd.f32 %v1803_v10, %v1735_v38  ;;  %v1303_v16 = vmul.f32 %v3904_v36, %v3732_v29  ;;  %v1304_v35 = vmul.f32 %v3912_v17, %v3732_v29 }
 0x136   : > { %5024 = vst [vmem:[#allocation12_spill] sm:$0xff] %v3966_v14  ;;  %v3986_v58 = vld [vmem:[#allocation2 + $0x62] sm:$0xff]  ;;  %1219 = vst.msk [vmem:[#allocation2 + $0x78] sm:$0xff] %vm1203_vm3, %v1164_v28  ;;  %v759_v22 = vmax.f32 %v593_v45, 0.0  ;;  %v596_v19 = vadd.f32 %v3711_v60, %v595_v40  ;;  %v2923_v21 = vpop.f32.mrb[35].mxu0  ;;  %v1935_v57 = vadd.f32 %v1903_v9, %v1834_v56  ;;  %v2003_v63 = vmul.f32 %v3760_v34, %v3972_v32 }
 0x137   : > { %v2236_v38 = vmin.f32 %v2204_v2, 6.0  ;;  %v1904_v10 = vmul.f32 %v3758_v55, %v3977_v13  ;;  %v1403_v36 = vmul.f32 %v3914_v44, %v3740_v49  ;;  %v1404_v17 = vmul.f32 %v1966_v8, %v3740_v49 }
 0x138   : > { %v813_v4 = vmin.f32 %v759_v22, 6.0  ;;  %v760_v3 = vmax.f32 %v596_v19, 0.0  ;;  %v2035_v28 = vadd.f32 %v2003_v63, %v1935_v57  ;;  %v2103_v45 = vmul.f32 %v3762_v37, %v3986_v58  ;;  %v4011_v19 = vpop.f32.mrb[32].mxu1 }
 0x139   : > { %v1435_v40 = vadd.f32 %v1403_v36, %v1303_v16  ;;  %v1436_v56 = vadd.f32 %v1404_v17, %v1304_v35  ;;  %v1503_v9 = vmul.f32 %v3925_v7, %v3742_v50  ;;  %v1504_v2 = vmul.f32 %v3940_v41, %v3742_v50  ;;  %5025 = vst [vmem:[#allocation13_spill] sm:$0xff] %v4011_v19 }
 0x13a   : > { %v2205_v43 = vmax.f32 %v3984_v61, 0.0  ;;  %1220 = vst.msk [vmem:[#allocation2 + $0x80] sm:$0xff] %vm1203_vm3, %v813_v4  ;;  %v814_v44 = vmin.f32 %v760_v3, 6.0  ;;  %v2135_v8 = vadd.f32 %v2103_v45, %v2035_v28  ;;  %v1604_v22 = vmul.f32 %v3970_v59, %v3750_v53  ;;  %v2978_v61 = vpop.f32.mrb[33].mxu1 }
 0x13b   : > { %v600_v21 = vpop.f32.mrb[36].mxu0  ;;  %v1936_v16 = vadd.f32 %v1904_v10, %v1835_v42  ;;  %v4013_v35 = vld [vmem:[#allocation2 + $0x69] sm:$0xff]  ;;  %v1535_v7 = vadd.f32 %v1503_v9, %v1435_v40  ;;  %v1536_v63 = vadd.f32 %v1504_v2, %v1436_v56  ;;  %v1605_v41 = vmul.f32 %v3977_v13, %v3750_v53  ;;  %v4025_v10 = vpop.f32.mrb[34].mxu1 }
 0x13c   : > { %v4015_v57 = vld [vmem:[#allocation2 + $0x6a] sm:$0xff]  ;;  %v1166_v36 = vmul.f32 %v3748_v52, %v814_v44  ;;  %v601_v17 = vadd.f32 %v3711_v60, %v600_v21  ;;  %v2926_v4 = vpop.f32.mrb[37].mxu0  ;;  %v2004_v3 = vmul.f32 %v3760_v34, %v4013_v35  ;;  %v1704_v42 = vmul.f32 %v3972_v32, %v3752_v30  ;;  %5026 = vst [vmem:[#allocation14_spill] sm:$0xff] %v4025_v10  ;;  %v2979_v44 = vpop.f32.mrb[35].mxu1 }
 0x13d   : > { %v603_v28 = vpop.f32.mrb[38].mxu0  ;;  %v2174_v45 = vadd.f32 %v3885_v62, %v2135_v8  ;;  %v1636_v40 = vadd.f32 %v1604_v22, %v1535_v7  ;;  %v1637_v56 = vadd.f32 %v1605_v41, %v1536_v63  ;;  %v1705_v9 = vmul.f32 %v4013_v35, %v3752_v30  ;;  %v4030_v2 = vld [vmem:[#allocation2 + $0x78] sm:$0xff] }
 0x13e   : > { %1221 = vst.msk [vmem:[#allocation2 + $0x88] sm:$0xff] %vm1203_vm3, %v1166_v36  ;;  %v761_v21 = vmax.f32 %v601_v17, 0.0  ;;  %v604_v61 = vadd.f32 %v3711_v60, %v603_v28  ;;  %v2927_v4 = vpop.f32.mrb[39].mxu0  ;;  %v2036_v14 = vadd.f32 %v2004_v3, %v1936_v16  ;;  %v2104_v10 = vmul.f32 %v3762_v37, %v4015_v57 }
 0x13f   : > { %v2206_v11 = vmax.f32 %v2174_v45, 0.0  ;;  %v1736_v8 = vadd.f32 %v1704_v42, %v1636_v40  ;;  %v1737_v22 = vadd.f32 %v1705_v9, %v1637_v56  ;;  %v1804_v7 = vmul.f32 %v3986_v58, %v3754_v31  ;;  %v4062_v9 = vpop.f32.mrb[36].mxu1 }
 0x140   : > { %v815_v63 = vmin.f32 %v761_v21, 6.0  ;;  %v762_v41 = vmax.f32 %v604_v61, 0.0  ;;  %v2136_v20 = vadd.f32 %v2104_v10, %v2036_v14  ;;  %v1905_v36 = vmul.f32 %v3758_v55, %v4030_v2  ;;  %5031 = vst [vmem:[#allocation17_spill] sm:$0xff] %v4062_v9 }
 0x141   : > { %v5027_v17 = vunpack.i.h.bf16 %v3704_v48  ;;  %v2237_v3 = vmin.f32 %v2205_v43, 6.0  ;;  %v5029_v28 = vunpack.i.l.bf16 %v3756_v54  ;;  %v1836_v45 = vadd.f32 %v1804_v7, %v1736_v8  ;;  %v4051_v40 = vld [vmem:[#allocation2 + $0x80] sm:$0xff]  ;;  %v2982_v8 = vpop.f32.mrb[37].mxu1 }
 0x142   : > { %v4053_v56 = vld [vmem:[#allocation2 + $0x79] sm:$0xff]  ;;  %v1167_v10 = vmul.f32 %v3730_v26, %v815_v63  ;;  %v816_v48 = vmin.f32 %v762_v41, 6.0  ;;  %v1906_v43 = vmul.f32 %v3758_v55, %v4051_v40  ;;  %v1305_v4 = vmul.f32 %v3970_v59, %v3732_v29 }
 0x143   : > { %v4044_v16 = vsel %vm1203_vm3, %v3961_v0, %v5027_v17  ;;  %v4049_v42 = vsel %vm1203_vm3, %v2236_v38, %v5029_v28  ;;  %v4055_v14 = vld [vmem:[#allocation2 + $0x7a] sm:$0xff]  ;;  %v1805_v0 = vmul.f32 %v4015_v57, %v3754_v31  ;;  %v4064_v38 = vmin.f32 %v2206_v11, 6.0  ;;  %v608_v44 = vpop.f32.mrb[40].mxu0  ;;  %v4076_v17 = vpop.f32.mrb[38].mxu1 }
 0x144   : > { %5028 = vst [vmem:[#allocation15_spill] sm:$0xff] %v4044_v16  ;;  %5030 = vst [vmem:[#allocation16_spill] sm:$0xff] %v4049_v42  ;;  %v1937_v21 = vadd.f32 %v1905_v36, %v1836_v45  ;;  %v2005_v61 = vmul.f32 %v3760_v34, %v4053_v56  ;;  %v2175_v7 = vadd.f32 %v3885_v62, %v2136_v20  ;;  %v2930_v41 = vpop.f32.mrb[41].mxu0 }
 0x145   : > { %1222 = vst.msk [vmem:[#allocation2 + $0x90] sm:$0xff] %vm1203_vm3, %v1167_v10  ;;  %1223 = vst.msk [vmem:[#allocation2 + $0x98] sm:$0xff] %vm1203_vm3, %v816_v48  ;;  %v609_v63 = vadd.f32 %v3711_v60, %v608_v44  ;;  %v1837_v11 = vadd.f32 %v1805_v0, %v1737_v22  ;;  %v2105_v36 = vmul.f32 %v3762_v37, %v4055_v14  ;;  %v611_v28 = vpop.f32.mrb[42].mxu0  ;;  %v4078_v45 = vld [vmem:[#allocation2 + $0x81] sm:$0xff]  ;;  %v2983_v48 = vpop.f32.mrb[39].mxu1 }
 0x146   : > { %5032 = vst [vmem:[#allocation18_spill] sm:$0xff] %v4076_v17  ;;  %v2037_v59 = vadd.f32 %v2005_v61, %v1937_v21  ;;  %v4080_v8 = vld [vmem:[#allocation2 + $0x82] sm:$0xff]  ;;  %v1306_v10 = vmul.f32 %v3977_v13, %v3732_v29  ;;  %v1405_v20 = vmul.f32 %v3972_v32, %v3740_v49  ;;  %v1406_v22 = vmul.f32 %v4013_v35, %v3740_v49  ;;  %v2931_v41 = vpop.f32.mrb[43].mxu0 }
 0x147   : > { %v763_v0 = vmax.f32 %v609_v63, 0.0  ;;  %v612_v44 = vadd.f32 %v3711_v60, %v611_v28  ;;  %v1938_v42 = vadd.f32 %v1906_v43, %v1837_v11  ;;  %v2006_v21 = vmul.f32 %v3760_v34, %v4078_v45 }
 0x148   : > { %v2106_v61 = vmul.f32 %v3762_v37, %v4080_v8  ;;  %v1437_v17 = vadd.f32 %v1405_v20, %v1305_v4  ;;  %v1438_v13 = vadd.f32 %v1406_v22, %v1306_v10  ;;  %v1505_v32 = vmul.f32 %v3986_v58, %v3742_v50  ;;  %v4102_v58 = vpop.f32.mrb[40].mxu1 }
 0x149   : > { %v817_v9 = vmin.f32 %v763_v0, 6.0  ;;  %v764_v16 = vmax.f32 %v612_v44, 0.0  ;;  %v2038_v35 = vadd.f32 %v2006_v21, %v1938_v42  ;;  %v2137_v48 = vadd.f32 %v2105_v36, %v2037_v59  ;;  %5033 = vst [vmem:[#allocation19_spill] sm:$0xff] %v4102_v58  ;;  %v2986_v20 = vpop.f32.mrb[41].mxu1 }
 0x14a   : > { %v2207_v63 = vmax.f32 %v2175_v7, 0.0  ;;  %v1506_v28 = vmul.f32 %v4015_v57, %v3742_v50  ;;  %v1537_v43 = vadd.f32 %v1505_v32, %v1437_v17  ;;  %v1606_v11 = vmul.f32 %v4030_v2, %v3750_v53  ;;  %v4121_v44 = vpop.f32.mrb[42].mxu1 }
 0x14b   : > { %v1169_v41 = vmul.f32 %v3748_v52, %v817_v9  ;;  %v818_v19 = vmin.f32 %v764_v16, 6.0  ;;  %v2138_v4 = vadd.f32 %v2106_v61, %v2038_v35  ;;  %v1607_v10 = vmul.f32 %v4051_v40, %v3750_v53  ;;  %v616_v36 = vpop.f32.mrb[44].mxu0  ;;  %5036 = vst [vmem:[#allocation21_spill] sm:$0xff] %v4121_v44 }
 0x14c   : > { %v5034_v42 = vunpack.i.h.bf16 %v3756_v54  ;;  %v1538_v57 = vadd.f32 %v1506_v28, %v1438_v13  ;;  %v1638_v17 = vadd.f32 %v1606_v11, %v1537_v43  ;;  %v1706_v59 = vmul.f32 %v4053_v56, %v3752_v30  ;;  %v2934_v54 = vpop.f32.mrb[45].mxu0  ;;  %v4119_v0 = vld [vmem:[#allocation2 + $0x90] sm:$0xff]  ;;  %v4128_v35 = vld [vmem:[#allocation2 + $0x98] sm:$0xff] }
 0x14d   : > { %1224 = vst.msk [vmem:[#allocation2 + $0xa0] sm:$0xff] %vm1203_vm3, %v1169_v41  ;;  %v1170_v16 = vmul.f32 %v3730_v26, %v818_v19  ;;  %v4114_v9 = vadd.f32 %v3885_v62, %v2137_v48  ;;  %v617_v22 = vadd.f32 %v3711_v60, %v616_v36  ;;  %v4124_v21 = vadd.f32 %v3885_v62, %v2138_v4  ;;  %v619_v61 = vpop.f32.mrb[46].mxu0  ;;  %v2987_v60 = vpop.f32.mrb[43].mxu1  ;;  %v4142_v41 = vld [vmem:[%s4999_s2] ss:$0 sm:$0xff] }
 0x14e   : > { %v4107_v7 = vsel %vm1203_vm3, %v2237_v3, %v5034_v42  ;;  %v1707_v3 = vmul.f32 %v4078_v45, %v3752_v30  ;;  %v1639_v13 = vadd.f32 %v1607_v10, %v1538_v57  ;;  %v1738_v32 = vadd.f32 %v1706_v59, %v1638_v17  ;;  %v2935_v10 = vpop.f32.mrb[47].mxu0  ;;  %v4145_v42 = vld [vmem:[#allocation2 + $0x91] sm:$0xff] }
 0x14f   : > { %5035 = vst [vmem:[#allocation20_spill] sm:$0xff] %v4107_v7  ;;  %v1806_v19 = vmul.f32 %v4055_v14, %v3754_v31  ;;  %v4130_v48 = vmin.f32 %v2207_v63, 6.0  ;;  %v5037_v28 = vunpack.i.l.bf16 %v3715_v5  ;;  %1225 = vst.msk [vmem:[#allocation2 + $0xa8] sm:$0xff] %vm1203_vm3, %v1170_v16  ;;  %v765_v11 = vmax.f32 %v617_v22, 0.0  ;;  %v4151_v17 = vld [vmem:[#allocation2 + $0x92] sm:$0xff] }
 0x150   : > { %v620_v4 = vadd.f32 %v4142_v41, %v619_v61  ;;  %v1739_v63 = vadd.f32 %v1707_v3, %v1639_v13  ;;  %v1807_v36 = vmul.f32 %v4080_v8, %v3754_v31  ;;  %v2208_v59 = vmax.f32 %v4114_v9, 0.0 }
 0x151   : > { %v4136_v43 = vsel %vm1203_vm3, %v4064_v38, %v5037_v28  ;;  %v1838_v57 = vadd.f32 %v1806_v19, %v1738_v32  ;;  %v1907_v38 = vmul.f32 %v3758_v55, %v4119_v0  ;;  %v819_v20 = vmin.f32 %v765_v11, 6.0  ;;  %v4166_v11 = vpop.f32.mrb[44].mxu1 }
 0x152   : > { %5038 = vst [vmem:[#allocation22_spill] sm:$0xff] %v4136_v43  ;;  %v766_v16 = vmax.f32 %v620_v4, 0.0  ;;  %v1908_v22 = vmul.f32 %v3758_v55, %v4128_v35  ;;  %v2209_v54 = vmax.f32 %v4124_v21, 0.0  ;;  %v1839_v61 = vadd.f32 %v1807_v36, %v1739_v63  ;;  %5040 = vst [vmem:[#allocation23_spill] sm:$0xff] %v4166_v11 }
 0x153   : > { %v1939_v3 = vadd.f32 %v1907_v38, %v1838_v57  ;;  %v2007_v13 = vmul.f32 %v3760_v34, %v4145_v42  ;;  %1226 = vst.msk [vmem:[#allocation2 + $0xb0] sm:$0xff] %vm1203_vm3, %v819_v20  ;;  %v2107_v19 = vmul.f32 %v3762_v37, %v4151_v17  ;;  %v5039_v9 = vmax.f32 %v3873_v12, 0.0  ;;  %v624_v21 = vpop.f32.mrb[48].mxu0  ;;  %v2990_v12 = vpop.f32.mrb[45].mxu1 }
 0x154   : > { %v820_v32 = vmin.f32 %v766_v16, 6.0  ;;  %v1307_v28 = vmul.f32 %v4030_v2, %v3732_v29  ;;  %v1940_v4 = vadd.f32 %v1908_v22, %v1839_v61  ;;  %v4168_v10 = vld [vmem:[#allocation2 + $0x99] sm:$0xff]  ;;  %v1308_v57 = vmul.f32 %v4051_v40, %v3732_v29  ;;  %v2938_v16 = vpop.f32.mrb[49].mxu0 }
 0x155   : > { %v833_v60 = vmin.f32 %v5039_v9, 6.0  ;;  %v2039_v63 = vadd.f32 %v2007_v13, %v1939_v3  ;;  %v4170_v36 = vld [vmem:[#allocation2 + $0x9a] sm:$0xff]  ;;  %v1407_v38 = vmul.f32 %v4053_v56, %v3740_v49  ;;  %v625_v2 = vadd.f32 %v4142_v41, %v624_v21  ;;  %v4182_v3 = vpop.f32.mrb[46].mxu1  ;;  %v627_v13 = vpop.f32.mrb[50].mxu0 }
 0x156   : > { %v1172_v20 = vmul.f32 %v3748_v52, %v820_v32  ;;  %v2008_v22 = vmul.f32 %v3760_v34, %v4168_v10  ;;  %v2108_v61 = vmul.f32 %v3762_v37, %v4170_v36  ;;  %5041 = vst [vmem:[#allocation24_spill] sm:$0xff] %v4182_v3  ;;  %v1408_v56 = vmul.f32 %v4078_v45, %v3740_v49  ;;  %v2991_v32 = vpop.f32.mrb[47].mxu1  ;;  %v2939_v43 = vpop.f32.mrb[51].mxu0 }
 0x157   : > { %v2139_v9 = vadd.f32 %v2107_v19, %v2039_v63  ;;  %v1185_v40 = vmul.f32 %v3730_v26, %v833_v60  ;;  %v1439_v12 = vadd.f32 %v1407_v38, %v1307_v28  ;;  %v767_v21 = vmax.f32 %v625_v2, 0.0 }
 0x158   : > { %1227 = vst.msk [vmem:[#allocation2 + $0xb8] sm:$0xff] %vm1203_vm3, %v1172_v20  ;;  %v628_v16 = vadd.f32 %v4142_v41, %v627_v13  ;;  %v2040_v7 = vadd.f32 %v2008_v22, %v1940_v4  ;;  %v1507_v11 = vmul.f32 %v4055_v14, %v3742_v50  ;;  %v1440_v19 = vadd.f32 %v1408_v56, %v1308_v57 }
 0x159   : > { %v2178_v3 = vadd.f32 %v3885_v62, %v2139_v9  ;;  %1240 = vst.msk [vmem:[#allocation2 + $0x120] sm:$0xff] %vm1203_vm3, %v1185_v40  ;;  %v1508_v45 = vmul.f32 %v4080_v8, %v3742_v50  ;;  %v1608_v60 = vmul.f32 %v4119_v0, %v3750_v53  ;;  %v821_v28 = vmin.f32 %v767_v21, 6.0  ;;  %v4203_v9 = vld [vmem:[#allocation2 + $0xa8] sm:$0xff] }
 0x15a   : > { %v768_v63 = vmax.f32 %v628_v16, 0.0  ;;  %v2140_v38 = vadd.f32 %v2108_v61, %v2040_v7  ;;  %v1539_v20 = vadd.f32 %v1507_v11, %v1439_v12  ;;  %v1609_v14 = vmul.f32 %v4128_v35, %v3750_v53  ;;  %v4205_v40 = vld [vmem:[#allocation2 + $0xb0] sm:$0xff]  ;;  %v4207_v7 = vpop.f32.mrb[48].mxu1 }
 0x15b   : > { %v2210_v43 = vmax.f32 %v2178_v3, 0.0  ;;  %v1540_v4 = vadd.f32 %v1508_v45, %v1440_v19  ;;  %v1708_v2 = vmul.f32 %v4145_v42, %v3752_v30  ;;  %v1173_v57 = vmul.f32 %v3730_v26, %v821_v28  ;;  %5042 = vst [vmem:[#allocation25_spill] sm:$0xff] %v4207_v7  ;;  %v632_v3 = vpop.f32.mrb[52].mxu0  ;;  %v2994_v32 = vpop.f32.mrb[49].mxu1 }
 0x15c   : > { %v822_v22 = vmin.f32 %v768_v63, 6.0  ;;  %v2179_v8 = vadd.f32 %v3885_v62, %v2140_v38  ;;  %v1640_v13 = vadd.f32 %v1608_v60, %v1539_v20  ;;  %v4209_v11 = vmin.f32 %v2208_v59, 6.0  ;;  %v2942_v19 = vpop.f32.mrb[53].mxu0  ;;  %v4222_v60 = vpop.f32.mrb[50].mxu1 }
 0x15d   : > { %v4211_v61 = vmin.f32 %v2209_v54, 6.0  ;;  %v1641_v56 = vadd.f32 %v1609_v14, %v1540_v4  ;;  %v1709_v12 = vmul.f32 %v4168_v10, %v3752_v30  ;;  %1228 = vst.msk [vmem:[#allocation2 + $0xc0] sm:$0xff] %vm1203_vm3, %v1173_v57  ;;  %v633_v16 = vadd.f32 %v4142_v41, %v632_v3  ;;  %v4220_v54 = vld [vmem:[#allocation2 + $0xa9] sm:$0xff]  ;;  %5043 = vst [vmem:[#allocation26_spill] sm:$0xff] %v4222_v60  ;;  %v635_v28 = vpop.f32.mrb[54].mxu0  ;;  %v2995_v57 = vpop.f32.mrb[51].mxu1 }
 0x15e   : > { %1229 = vst.msk [vmem:[#allocation2 + $0xc8] sm:$0xff] %vm1203_vm3, %v822_v22  ;;  %v2211_v21 = vmax.f32 %v2179_v8, 0.0  ;;  %v1740_v45 = vadd.f32 %v1708_v2, %v1640_v13  ;;  %v1808_v59 = vmul.f32 %v4151_v17, %v3754_v31  ;;  %v1809_v38 = vmul.f32 %v4170_v36, %v3754_v31  ;;  %v4232_v2 = vld [vmem:[#allocation2 + $0xaa] sm:$0xff]  ;;  %v2943_v3 = vpop.f32.mrb[55].mxu0 }
 0x15f   : > { %v1741_v63 = vadd.f32 %v1709_v12, %v1641_v56  ;;  %v1909_v20 = vmul.f32 %v3758_v55, %v4203_v9  ;;  %v1910_v4 = vmul.f32 %v3758_v55, %v4205_v40  ;;  %v4230_v14 = vld [vmem:[#allocation2 + $0xb1] sm:$0xff]  ;;  %v4234_v22 = vmin.f32 %v2210_v43, 6.0 }
 0x160   : > { %v769_v8 = vmax.f32 %v633_v16, 0.0  ;;  %v636_v13 = vadd.f32 %v4142_v41, %v635_v28  ;;  %v1840_v56 = vadd.f32 %v1808_v59, %v1740_v45  ;;  %v4237_v12 = vld [vmem:[#allocation2 + $0xb2] sm:$0xff]  ;;  %v2243_v32 = vmin.f32 %v2211_v21, 6.0 }
 0x161   : > { %v1841_v19 = vadd.f32 %v1809_v38, %v1741_v63  ;;  %v2009_v60 = vmul.f32 %v3760_v34, %v4220_v54  ;;  %v2010_v7 = vmul.f32 %v3760_v34, %v4230_v14  ;;  %v2109_v43 = vmul.f32 %v3762_v37, %v4232_v2 }
 0x162   : > { %v823_v44 = vmin.f32 %v769_v8, 6.0  ;;  %v770_v58 = vmax.f32 %v636_v13, 0.0  ;;  %v1941_v57 = vadd.f32 %v1909_v20, %v1840_v56  ;;  %v2110_v45 = vmul.f32 %v3762_v37, %v4237_v12 }
 0x163   : > { %v1942_v16 = vadd.f32 %v1910_v4, %v1841_v19  ;;  %v780_v59 = vmax.f32 %v3919_v33, 0.0  ;;  %v781_v21 = vmax.f32 %v3954_v39, 0.0  ;;  %v684_v8 = vadd.f32 %v4142_v41, %v3899_v24 }
 0x164   : > { %v1175_v28 = vmul.f32 %v3748_v52, %v823_v44  ;;  %v824_v63 = vmin.f32 %v770_v58, 6.0  ;;  %v2041_v38 = vadd.f32 %v2009_v60, %v1941_v57  ;;  %v689_v4 = vadd.f32 %v4142_v41, %v3927_v15 }
 0x165   : > { %v2042_v13 = vadd.f32 %v2010_v7, %v1942_v16  ;;  %v834_v20 = vmin.f32 %v780_v59, 6.0  ;;  %v835_v3 = vmin.f32 %v781_v21, 6.0  ;;  %v782_v19 = vmax.f32 %v684_v8, 0.0 }
 0x166   : > { %1230 = vst.msk [vmem:[#allocation2 + $0xd0] sm:$0xff] %vm1203_vm3, %v1175_v28  ;;  %v1176_v56 = vmul.f32 %v3730_v26, %v824_v63  ;;  %v2141_v33 = vadd.f32 %v2109_v43, %v2041_v38  ;;  %v1309_v39 = vmul.f32 %v4119_v0, %v3732_v29  ;;  %v783_v44 = vmax.f32 %v689_v4, 0.0 }
 0x167   : > { %v2142_v58 = vadd.f32 %v2110_v45, %v2042_v13  ;;  %1241 = vst.msk [vmem:[#allocation2 + $0x128] sm:$0xff] %vm1203_vm3, %v834_v20  ;;  %v1187_v24 = vmul.f32 %v3748_v52, %v835_v3  ;;  %v1310_v7 = vmul.f32 %v4128_v35, %v3732_v29  ;;  %v836_v60 = vmin.f32 %v782_v19, 6.0  ;;  %v4285_v3 = vld [vmem:[#allocation2 + $0xc0] sm:$0xff] }
 0x168   : > { %1231 = vst.msk [vmem:[#allocation2 + $0xd8] sm:$0xff] %vm1203_vm3, %v1176_v56  ;;  %v2180_v15 = vadd.f32 %v3885_v62, %v2141_v33  ;;  %v1409_v57 = vmul.f32 %v4145_v42, %v3740_v49  ;;  %v1410_v0 = vmul.f32 %v4168_v10, %v3740_v49  ;;  %v837_v16 = vmin.f32 %v783_v44, 6.0  ;;  %v4305_v44 = vld [vmem:[#allocation2 + $0xc8] sm:$0xff] }
 0x169   : > { %v2181_v43 = vadd.f32 %v3885_v62, %v2142_v58  ;;  %1242 = vst.msk [vmem:[#allocation2 + $0x130] sm:$0xff] %vm1203_vm3, %v1187_v24  ;;  %v1509_v45 = vmul.f32 %v4151_v17, %v3742_v50  ;;  %v1510_v35 = vmul.f32 %v4170_v36, %v3742_v50  ;;  %v1188_v21 = vmul.f32 %v3730_v26, %v836_v60  ;;  %v4318_v60 = vld [vmem:[#allocation2 + $0xc1] sm:$0xff] }
 0x16a   : > { %v2212_v59 = vmax.f32 %v2180_v15, 0.0  ;;  %v1441_v28 = vadd.f32 %v1409_v57, %v1309_v39  ;;  %v1442_v63 = vadd.f32 %v1410_v0, %v1310_v7  ;;  %1244 = vst.msk [vmem:[#allocation2 + $0x140] sm:$0xff] %vm1203_vm3, %v837_v16  ;;  %v1610_v10 = vmul.f32 %v4203_v9, %v3750_v53  ;;  %v4322_v57 = vld [vmem:[#allocation2 + $0xfa] sm:$0xff] }
 0x16b   : > { %v2213_v42 = vmax.f32 %v2181_v43, 0.0  ;;  %v1611_v38 = vmul.f32 %v4205_v40, %v3750_v53  ;;  %v1710_v17 = vmul.f32 %v4220_v54, %v3752_v30  ;;  %1243 = vst.msk [vmem:[#allocation2 + $0x138] sm:$0xff] %vm1203_vm3, %v1188_v21  ;;  %v1711_v20 = vmul.f32 %v4230_v14, %v3752_v30  ;;  %v4339_v21 = vld [vmem:[#allocation2 + $0xc2] sm:$0xff] }
 0x16c   : > { %v2244_v8 = vmin.f32 %v2212_v59, 6.0  ;;  %v1541_v36 = vadd.f32 %v1509_v45, %v1441_v28  ;;  %v1542_v13 = vadd.f32 %v1510_v35, %v1442_v63  ;;  %v5044_v4 = vunpack.i.h.bf16 %v3715_v5 }
 0x16d   : > { %v5045_v33 = vunpack.i.l.bf16 %v3720_v18  ;;  %v5047_v39 = vunpack.i.h.bf16 %v3720_v18  ;;  %v2245_v24 = vmin.f32 %v2213_v42, 6.0  ;;  %v5049_v5 = vunpack.i.l.bf16 %v3744_v51  ;;  %v4335_v16 = vld [vmem:[#allocation2 + $0xc9] sm:$0xff] }
 0x16e   : > { %v4291_v56 = vsel %vm1203_vm3, %v4130_v48, %v5044_v4  ;;  %v5051_v7 = vunpack.i.h.bf16 %v3744_v51  ;;  %v1642_v15 = vadd.f32 %v1610_v10, %v1541_v36  ;;  %v1643_v18 = vadd.f32 %v1611_v38, %v1542_v13  ;;  %v4341_v28 = vld [vmem:[#allocation2 + $0xca] sm:$0xff]  ;;  %v4356_v36 = vld [vmem:[#allocation2 + $0xf2] sm:$0xff] }
 0x16f   : > { %v4297_v19 = vsel %vm1203_vm3, %v4209_v11, %v5045_v33  ;;  %v4303_v58 = vsel %vm1203_vm3, %v4211_v61, %v5047_v39  ;;  %v4311_v48 = vsel %vm1203_vm3, %v4234_v22, %v5049_v5  ;;  %v4320_v61 = vld [vmem:[#allocation2 + $0xf9] sm:$0xff]  ;;  %v5053_v0 = vunpack.i.l.bf16 %v3767_v47  ;;  %v4345_v42 = vld [vmem:[#allocation2 + $0x110] sm:$0xff] }
 0x170   : > { %5046 = vst [vmem:[#allocation27_spill] sm:$0xff] %v4297_v19  ;;  %5048 = vst [vmem:[#allocation28_spill] sm:$0xff] %v4303_v58  ;;  %v4316_v11 = vsel %vm1203_vm3, %v2243_v32, %v5051_v7  ;;  %v1810_v51 = vmul.f32 %v4232_v2, %v3754_v31  ;;  %v1811_v22 = vmul.f32 %v4237_v12, %v3754_v31  ;;  %v5055_v10 = vunpack.i.h.bf16 %v3767_v47  ;;  %v4362_v33 = vld [vmem:[#allocation2 + $0x111] sm:$0xff] }
 0x171   : > { %5050 = vst [vmem:[#allocation29_spill] sm:$0xff] %v4311_v48  ;;  %5052 = vst [vmem:[#allocation30_spill] sm:$0xff] %v4316_v11  ;;  %v4327_v43 = vsel %vm1203_vm3, %v2244_v8, %v5053_v0  ;;  %v1911_v32 = vmul.f32 %v3758_v55, %v4285_v3  ;;  %v1742_v45 = vadd.f32 %v1710_v17, %v1642_v15  ;;  %v4364_v39 = vld [vmem:[#allocation2 + $0xd8] sm:$0xff] }
 0x172   : > { %5054 = vst [vmem:[#allocation31_spill] sm:$0xff] %v4327_v43  ;;  %v1743_v35 = vadd.f32 %v1711_v20, %v1643_v18  ;;  %v1912_v59 = vmul.f32 %v3758_v55, %v4305_v44  ;;  %v692_v63 = vadd.f32 %v4142_v41, %v3938_v6  ;;  %v4350_v38 = vsel %vm1203_vm3, %v2245_v24, %v5055_v10  ;;  %v4366_v24 = vld [vmem:[#allocation2 + $0xd9] sm:$0xff] }
 0x173   : > { %5056 = vst [vmem:[#allocation32_spill] sm:$0xff] %v4350_v38  ;;  %v2011_v17 = vmul.f32 %v3760_v34, %v4318_v60  ;;  %v1717_v8 = vmul.f32 %v3752_v30, %v4320_v61  ;;  %v1817_v13 = vmul.f32 %v3754_v31, %v4322_v57  ;;  %v1842_v6 = vadd.f32 %v1810_v51, %v1742_v45  ;;  %v4382_v10 = vld [vmem:[#allocation2 + $0xda] sm:$0xff] }
 0x174   : > { %v1843_v20 = vadd.f32 %v1811_v22, %v1743_v35  ;;  %v2012_v47 = vmul.f32 %v3760_v34, %v4335_v16  ;;  %v784_v4 = vmax.f32 %v692_v63, 0.0  ;;  %v2111_v5 = vmul.f32 %v3762_v37, %v4339_v21  ;;  %v4378_v35 = vld [vmem:[#allocation2 + $0x108] sm:$0xff]  ;;  %v4380_v63 = vld [vmem:[#allocation2 + $0x112] sm:$0xff] }
 0x175   : > { %v2112_v7 = vmul.f32 %v3762_v37, %v4341_v28  ;;  %v1749_v15 = vadd.f32 %v1717_v8, %v3876_v23  ;;  %v1918_v18 = vmul.f32 %v3758_v55, %v4345_v42  ;;  %v1943_v0 = vadd.f32 %v1911_v32, %v1842_v6  ;;  %v3151_v6 = vld [vmem:[%s4387_s10] sm:$0xff]  }
 0x176   : > { %v1944_v51 = vadd.f32 %v1912_v59, %v1843_v20  ;;  %v838_v22 = vmin.f32 %v784_v4, 6.0  ;;  %v1816_v45 = vmul.f32 %v3754_v31, %v4356_v36  ;;  %v2018_v32 = vmul.f32 %v3760_v34, %v4362_v33  ;;  %2884 = vmatprep.mubr.msk.bf16.mxu1 %vm2558_vm6, %v3151_v6 }
 0x177   : > { %v1849_v23 = vadd.f32 %v1817_v13, %v1749_v15  ;;  %v1315_v59 = vmul.f32 %v3732_v29, %v4364_v39  ;;  %v1415_v8 = vmul.f32 %v3740_v49, %v4366_v24  ;;  %v2043_v20 = vadd.f32 %v2011_v17, %v1943_v0 }
 0x178   : > { %v2044_v4 = vadd.f32 %v2012_v47, %v1944_v51  ;;  %v1190_v38 = vmul.f32 %v3748_v52, %v838_v22  ;;  %v1917_v43 = vmul.f32 %v3758_v55, %v4378_v35  ;;  %v2118_v13 = vmul.f32 %v3762_v37, %v4380_v63 }
 0x179   : > { %v1950_v11 = vadd.f32 %v1918_v18, %v1849_v23  ;;  %v1447_v15 = vadd.f32 %v1415_v8, %v1315_v59  ;;  %v1515_v48 = vmul.f32 %v3742_v50, %v4382_v10  ;;  %v2143_v58 = vadd.f32 %v2111_v5, %v2043_v20  ;;  %v4426_v59 = vld [vmem:[#allocation2 + $0x10a] sm:$0xff] }
 0x17a   : > { %v2144_v19 = vadd.f32 %v2112_v7, %v2044_v4  ;;  %1245 = vst.msk [vmem:[#allocation2 + $0x148] sm:$0xff] %vm1203_vm3, %v1190_v38  ;;  %v1311_v17 = vmul.f32 %v4203_v9, %v3732_v29  ;;  %v1312_v47 = vmul.f32 %v4205_v40, %v3732_v29  ;;  %v1411_v51 = vmul.f32 %v4220_v54, %v3740_v49 }
 0x17b   : > { %v2050_v18 = vadd.f32 %v2018_v32, %v1950_v11  ;;  %v1547_v0 = vadd.f32 %v1515_v48, %v1447_v15  ;;  %v1412_v22 = vmul.f32 %v4230_v14, %v3740_v49  ;;  %v2182_v23 = vadd.f32 %v3885_v62, %v2143_v58 }
 0x17c   : > { %v2183_v5 = vadd.f32 %v3885_v62, %v2144_v19  ;;  %v1511_v38 = vmul.f32 %v4232_v2, %v3742_v50  ;;  %v1512_v9 = vmul.f32 %v4237_v12, %v3742_v50  ;;  %v1443_v48 = vadd.f32 %v1411_v51, %v1311_v17  ;;  %v4424_v19 = vld [vmem:[#allocation2 + $0x109] sm:$0xff] }
 0x17d   : > { %v2150_v7 = vadd.f32 %v2118_v13, %v2050_v18  ;;  %v1648_v40 = vadd.f32 %v3851_v1, %v1547_v0  ;;  %v1444_v11 = vadd.f32 %v1412_v22, %v1312_v47  ;;  %v2214_v32 = vmax.f32 %v2182_v23, 0.0  ;;  %v4442_v0 = vld [vmem:[#allocation2 + $0xe2] sm:$0xff] }
 0x17e   : > { %v2215_v54 = vmax.f32 %v2183_v5, 0.0  ;;  %v1612_v14 = vmul.f32 %v4285_v3, %v3750_v53  ;;  %v1613_v58 = vmul.f32 %v4305_v44, %v3750_v53  ;;  %v1543_v8 = vadd.f32 %v1511_v38, %v1443_v48 }
 0x17f   : > { %v2189_v2 = vadd.f32 %v3885_v62, %v2150_v7  ;;  %v1748_v12 = vadd.f32 %v3857_v27, %v1648_v40  ;;  %v1544_v1 = vadd.f32 %v1512_v9, %v1444_v11  ;;  %v2017_v6 = vmul.f32 %v3760_v34, %v4424_v19 }
 0x180   : > { %v2117_v20 = vmul.f32 %v3762_v37, %v4426_v59  ;;  %v1712_v4 = vmul.f32 %v4318_v60, %v3752_v30  ;;  %v1713_v13 = vmul.f32 %v4335_v16, %v3752_v30  ;;  %v1644_v47 = vadd.f32 %v1612_v14, %v1543_v8  ;;  %v4464_v8 = vld [vmem:[#allocation2 + $0xf0] sm:$0xff] }
 0x181   : > { %v2221_v15 = vmax.f32 %v2189_v2, 0.0  ;;  %v1848_v17 = vadd.f32 %v1816_v45, %v1748_v12  ;;  %v1645_v62 = vadd.f32 %v1613_v58, %v1544_v1  ;;  %v4438_v18 = vmin.f32 %v2214_v32, 6.0  ;;  %v5057_v2 = vld [vmem:[#allocation13_spill] sm:$0xff] }
 0x182   : > { %v4440_v27 = vmin.f32 %v2215_v54, 6.0  ;;  %v2114_v51 = vmul.f32 %v4442_v0, %v3762_v37  ;;  %v1812_v22 = vmul.f32 %v4339_v21, %v3754_v31  ;;  %v1744_v5 = vadd.f32 %v1712_v4, %v1644_v47 }
 0x183   : > { %v1949_v23 = vadd.f32 %v1917_v43, %v1848_v17  ;;  %v1745_v38 = vadd.f32 %v1713_v13, %v1645_v62  ;;  %v1813_v45 = vmul.f32 %v4341_v28, %v3754_v31  ;;  %v4450_v9 = vmin.f32 %v2221_v15, 6.0  ;;  %v4469_v15 = vld [vmem:[#allocation2 + $0xf8] sm:$0xff] }
 0x184   : > { %v1913_v7 = vmul.f32 %v3758_v55, %v4364_v39  ;;  %v2013_v40 = vmul.f32 %v3760_v34, %v4366_v24  ;;  %v697_v48 = vadd.f32 %v4142_v41, %v3959_v46  ;;  %v1844_v32 = vadd.f32 %v1812_v22, %v1744_v5  ;;  %v4473_v22 = vld [vmem:[#allocation2 + $0xf1] sm:$0xff] }
 0x185   : > { %v2049_v11 = vadd.f32 %v2017_v6, %v1949_v23  ;;  %v1845_v54 = vadd.f32 %v1813_v45, %v1745_v38  ;;  %v2113_v43 = vmul.f32 %v3762_v37, %v4382_v10  ;;  %v700_v58 = vadd.f32 %v4142_v41, %v3981_v25  ;;  %v5058_v6 = vld [vmem:[#allocation9_spill] sm:$0xff]  ;;  %v5059_v45 = vld [vmem:[#allocation11_spill] sm:$0xff] }
 0x186   : > { %v785_v14 = vmax.f32 %v697_v48, 0.0  ;;  %v705_v12 = vadd.f32 %v4142_v41, %v5057_v2  ;;  %v1317_v1 = vmul.f32 %v4464_v8, %v3732_v29  ;;  %v1945_v46 = vadd.f32 %v1913_v7, %v1844_v32 }
 0x187   : > { %v2149_v4 = vadd.f32 %v2117_v20, %v2049_v11  ;;  %v1946_v13 = vadd.f32 %v5058_v6, %v1845_v54  ;;  %v1318_v17 = vmul.f32 %v4469_v15, %v3732_v29  ;;  %v786_v62 = vmax.f32 %v700_v58, 0.0  ;;  %v4480_v20 = vld [vmem:[%s5001_s4] ss:$0 sm:$0xff] }
 0x188   : > { %v839_v47 = vmin.f32 %v785_v14, 6.0  ;;  %v787_v25 = vmax.f32 %v705_v12, 0.0  ;;  %v1417_v23 = vmul.f32 %v4473_v22, %v3740_v49  ;;  %v2045_v38 = vadd.f32 %v2013_v40, %v1945_v46 }
 0x189   : > { %v2188_v5 = vadd.f32 %v4480_v20, %v2149_v4  ;;  %v2046_v7 = vadd.f32 %v5059_v45, %v1946_v13  ;;  %v1418_v48 = vmul.f32 %v4320_v61, %v3740_v49  ;;  %v840_v32 = vmin.f32 %v786_v62, 6.0 }
 0x18a   : > { %v1191_v11 = vmul.f32 %v3730_v26, %v839_v47  ;;  %v841_v54 = vmin.f32 %v787_v25, 6.0  ;;  %v1449_v14 = vadd.f32 %v1417_v23, %v1317_v1  ;;  %v2145_v2 = vadd.f32 %v2113_v43, %v2045_v38  ;;  %v4500_v47 = vpop.permute.xlu0 %3139  ;;  %v5061_v38 = vld [vmem:[#allocation8_spill] sm:$0xff] }
 0x18b   : > { %v2220_v58 = vmax.f32 %v2188_v5, 0.0  ;;  %v2146_v12 = vadd.f32 %v2114_v51, %v2046_v7  ;;  %v1450_v6 = vadd.f32 %v1418_v48, %v1318_v17  ;;  %1247 = vst.msk [vmem:[#allocation2 + $0x158] sm:$0xff] %vm1203_vm3, %v840_v32  ;;  %v1517_v4 = vmul.f32 %v4356_v36, %v3742_v50  ;;  %5060 = vst [vmem:[#allocation13_spill] sm:$0xff] %v4500_v47  ;;  %v5071_v47 = vld [vmem:[#allocation14_spill] sm:$0xff] }
 0x18c   : > { %1246 = vst.msk [vmem:[#allocation2 + $0x150] sm:$0xff] %vm1203_vm3, %v1191_v11  ;;  %v1193_v40 = vmul.f32 %v3748_v52, %v841_v54  ;;  %v1518_v46 = vmul.f32 %v4322_v57, %v3742_v50  ;;  %v1618_v13 = vmul.f32 %v4378_v35, %v3750_v53  ;;  %v2184_v43 = vadd.f32 %v4480_v20, %v2145_v2  ;;  %v4513_v54 = vld [vmem:[#allocation2 + $0x120] sm:$0xff] }
 0x18d   : > { %v2252_v1 = vmin.f32 %v2220_v58, 6.0  ;;  %v2185_v51 = vadd.f32 %v4480_v20, %v2146_v12  ;;  %v1619_v17 = vmul.f32 %v4345_v42, %v3750_v53  ;;  %v1549_v62 = vadd.f32 %v1517_v4, %v1449_v14  ;;  %v4515_v58 = vld [vmem:[#allocation2 + $0x128] sm:$0xff]  ;;  %v5063_v4 = vld [vmem:[#allocation7_spill] sm:$0xff] }
 0x18e   : > { %1248 = vst.msk [vmem:[#allocation2 + $0x160] sm:$0xff] %vm1203_vm3, %v1193_v40  ;;  %v1550_v25 = vadd.f32 %v1518_v46, %v1450_v6  ;;  %v1718_v23 = vmul.f32 %v4424_v19, %v3752_v30  ;;  %v1719_v5 = vmul.f32 %v4362_v33, %v3752_v30  ;;  %v5062_v45 = vunpack.i.l.bf16 %v5061_v38  ;;  %v4521_v40 = vld [vmem:[#allocation2 + $0x121] sm:$0xff] }
 0x18f   : > { %v2216_v11 = vmax.f32 %v2184_v43, 0.0  ;;  %v2217_v32 = vmax.f32 %v2185_v51, 0.0  ;;  %v1650_v14 = vadd.f32 %v1618_v13, %v1549_v62  ;;  %v1818_v12 = vmul.f32 %v4426_v59, %v3754_v31 }
 0x190   : > { %v4510_v7 = vsel %vm1203_vm3, %v2252_v1, %v5062_v45  ;;  %v1651_v2 = vadd.f32 %v1619_v17, %v1550_v25  ;;  %v1819_v6 = vmul.f32 %v4380_v63, %v3754_v31  ;;  %v5064_v46 = vunpack.i.l.bf16 %v5063_v4  ;;  %v4542_v25 = vld [vmem:[#allocation2 + $0x129] sm:$0xff] }
 0x191   : > { %v5066_v43 = vunpack.i.h.bf16 %v5063_v4  ;;  %v5068_v51 = vunpack.i.h.bf16 %v5061_v38  ;;  %v4544_v45 = vld [vmem:[#allocation2 + $0x122] sm:$0xff]  ;;  %v1919_v4 = vmul.f32 %v3758_v55, %v4513_v54  ;;  %v4554_v38 = vmin.f32 %v2216_v11, 6.0 }
 0x192   : > { %v4527_v1 = vsel %vm1203_vm3, %v4438_v18, %v5064_v46  ;;  %v1750_v18 = vadd.f32 %v1718_v23, %v1650_v14  ;;  %v1751_v46 = vadd.f32 %v1719_v5, %v1651_v2  ;;  %v2019_v48 = vmul.f32 %v3760_v34, %v4521_v40 }
 0x193   : > { %5065 = vst [vmem:[#allocation9_spill] sm:$0xff] %v4527_v1  ;;  %v4533_v13 = vsel %vm1203_vm3, %v4440_v27, %v5066_v43  ;;  %v4539_v17 = vsel %vm1203_vm3, %v4450_v9, %v5068_v51  ;;  %v1920_v27 = vmul.f32 %v3758_v55, %v4515_v58  ;;  %v4550_v43 = vld [vmem:[#allocation2 + $0x12a] sm:$0xff]  ;;  %5069 = vst [vmem:[#allocation8_spill] sm:$0xff] %v4554_v38  ;;  %v4556_v51 = vmin.f32 %v2217_v32, 6.0 }
 0x194   : > { %5067 = vst [vmem:[#allocation11_spill] sm:$0xff] %v4533_v13  ;;  %v1850_v23 = vadd.f32 %v1818_v12, %v1750_v18  ;;  %v1851_v5 = vadd.f32 %v1819_v6, %v1751_v46  ;;  %v2020_v14 = vmul.f32 %v3760_v34, %v4542_v25  ;;  %v2119_v2 = vmul.f32 %v3762_v37, %v4544_v45  ;;  %v4572_v18 = vpop.permute.xlu1 %3094 }
 0x195   : > { %5070 = vst [vmem:[#allocation7_spill] sm:$0xff] %v4556_v51  ;;  %v2120_v62 = vmul.f32 %v3762_v37, %v4550_v43  ;;  %v708_v11 = vadd.f32 %v4142_v41, %v5071_v47  ;;  %v1313_v32 = vmul.f32 %v4285_v3, %v3732_v29  ;;  %v1413_v9 = vmul.f32 %v4318_v60, %v3740_v49 }
 0x196   : > { %v1951_v12 = vadd.f32 %v1919_v4, %v1850_v23  ;;  %v1952_v6 = vadd.f32 %v1920_v27, %v1851_v5  ;;  %v1314_v46 = vmul.f32 %v4305_v44, %v3732_v29  ;;  %v1414_v51 = vmul.f32 %v4335_v16, %v3740_v49 }
 0x197   : > { %v788_v38 = vmax.f32 %v708_v11, 0.0  ;;  %v1445_v13 = vadd.f32 %v1413_v9, %v1313_v32  ;;  %v1513_v47 = vmul.f32 %v4339_v21, %v3742_v50  ;;  %v1614_v3 = vmul.f32 %v3750_v53, %v4364_v39 }
 0x198   : > { %v2051_v1 = vadd.f32 %v2019_v48, %v1951_v12  ;;  %v2052_v60 = vadd.f32 %v2020_v14, %v1952_v6  ;;  %v1446_v4 = vadd.f32 %v1414_v51, %v1314_v46  ;;  %v1514_v27 = vmul.f32 %v4341_v28, %v3742_v50  ;;  %v3158_v14 = vld [vmem:[#allocation2 + $0xe1] sm:$0xff] }
 0x199   : > { %v3097_v23 = vunpack.i.h.bf16 %v4572_v18  ;;  %v3096_v44 = vunpack.i.l.bf16 %v4572_v18  ;;  %v842_v5 = vmin.f32 %v788_v38, 6.0  ;;  %v1545_v16 = vadd.f32 %v1513_v47, %v1445_v13  ;;  %v5072_v13 = vld [vmem:[#allocation10_spill] sm:$0xff] }
 0x19a   : > { %v2151_v11 = vadd.f32 %v2119_v2, %v2051_v1  ;;  %v2152_v9 = vadd.f32 %v2120_v62, %v2052_v60  ;;  %v1546_v32 = vadd.f32 %v1514_v27, %v1446_v4  ;;  %v1714_v21 = vmul.f32 %v3752_v30, %v4366_v24  ;;  %v5074_v27 = vld [vmem:[#allocation15_spill] sm:$0xff] }
 0x19b   : > { %v1194_v39 = vmul.f32 %v3730_v26, %v842_v5  ;;  %v1646_v48 = vadd.f32 %v1614_v3, %v1545_v16  ;;  %v1715_v51 = vmul.f32 %v3158_v14, %v3752_v30  ;;  %v1814_v28 = vmul.f32 %v3754_v31, %v4382_v10  ;;  %v5075_v16 = vld [vmem:[#allocation17_spill] sm:$0xff] }
 0x19c   : > { %v2190_v12 = vadd.f32 %v4480_v20, %v2151_v11  ;;  %v2191_v38 = vadd.f32 %v4480_v20, %v2152_v9  ;;  %v1647_v1 = vadd.f32 %v5072_v13, %v1546_v32  ;;  %v1815_v62 = vmul.f32 %v4442_v0, %v3754_v31  ;;  %v5073_v0 = vld [vmem:[#allocation12_spill] sm:$0xff] }
 0x19d   : > { %1249 = vst.msk [vmem:[#allocation2 + $0x168] sm:$0xff] %vm1203_vm3, %v1194_v39  ;;  %v1746_v24 = vadd.f32 %v1714_v21, %v1646_v48  ;;  %v1915_v2 = vmul.f32 %v4464_v8, %v3758_v55  ;;  %v1916_v6 = vmul.f32 %v4469_v15, %v3758_v55  ;;  %v2015_v10 = vmul.f32 %v4473_v22, %v3760_v34  ;;  %v5076_v8 = vld [vmem:[#allocation18_spill] sm:$0xff] }
 0x19e   : > { %v2222_v46 = vmax.f32 %v2190_v12, 0.0  ;;  %v2223_v47 = vmax.f32 %v2191_v38, 0.0  ;;  %v1747_v3 = vadd.f32 %v1715_v51, %v1647_v1  ;;  %v2016_v60 = vmul.f32 %v3760_v34, %v4320_v61 }
 0x19f   : > { %v1846_v4 = vadd.f32 %v1814_v28, %v1746_v24  ;;  %v2525_v5 = vpack.c.bf16 %v5074_v27, %v5073_v0  ;;  %v713_v11 = vadd.f32 %v4142_v41, %v5075_v16  ;;  %v716_v9 = vadd.f32 %v4142_v41, %v5076_v8  ;;  %v4648_v27 = vld [vmem:[#allocation2 + $0x140] sm:$0xff] }
 0x1a0   : > { %v1847_v15 = vadd.f32 %v1815_v62, %v1747_v3  ;;  %v2115_v22 = vmul.f32 %v3762_v37, %v4356_v36  ;;  %v2116_v32 = vmul.f32 %v3762_v37, %v4322_v57  ;;  %v1319_v61 = vmul.f32 %v4378_v35, %v3732_v29  ;;  %v4653_v8 = vld [vmem:[#allocation2 + $0x139] sm:$0xff] }
 0x1a1   : > { %v2254_v21 = vmin.f32 %v2222_v46, 6.0  ;;  %v1947_v39 = vadd.f32 %v1915_v2, %v1846_v4  ;;  %v789_v48 = vmax.f32 %v713_v11, 0.0  ;;  %v790_v14 = vmax.f32 %v716_v9, 0.0  ;;  %v4655_v9 = vld [vmem:[#allocation2 + $0x141] sm:$0xff] }
 0x1a2   : > { %v2255_v51 = vmin.f32 %v2223_v47, 6.0  ;;  %v1948_v28 = vadd.f32 %v1916_v6, %v1847_v15  ;;  %v1320_v12 = vmul.f32 %v4345_v42, %v3732_v29  ;;  %v1419_v38 = vmul.f32 %v4424_v19, %v3740_v49  ;;  %v4657_v15 = vld [vmem:[#allocation2 + $0x13a] sm:$0xff] }
 0x1a3   : > { %v2047_v13 = vadd.f32 %v2015_v10, %v1947_v39  ;;  %v4623_v36 = vsel %vm2558_vm6, %v2525_v5, 0  ;;  %v843_v57 = vmin.f32 %v789_v48, 6.0  ;;  %v844_v1 = vmin.f32 %v790_v14, 6.0  ;;  %v4668_v48 = vld [vmem:[#allocation2 + $0x142] sm:$0xff] }
 0x1a4   : > { %v2048_v62 = vadd.f32 %v2016_v60, %v1948_v28  ;;  %v1420_v35 = vmul.f32 %v4362_v33, %v3740_v49  ;;  %v1451_v24 = vadd.f32 %v1419_v38, %v1319_v61  ;;  %v1519_v2 = vmul.f32 %v4426_v59, %v3742_v50  ;;  %v4637_v60 = vld [vmem:[#allocation2 + $0x138] sm:$0xff]  ;;  %v4672_v38 = vpop.permute.xlu1 %3104 }
 0x1a5   : > { %v2147_v6 = vadd.f32 %v2115_v22, %v2047_v13  ;;  %1250 = vst.msk [vmem:[#allocation2 + $0x170] sm:$0xff] %vm1203_vm3, %v843_v57  ;;  %v1196_v42 = vmul.f32 %v3748_v52, %v844_v1  ;;  %v1520_v19 = vmul.f32 %v4380_v63, %v3742_v50  ;;  %v1620_v10 = vmul.f32 %v4513_v54, %v3750_v53 }
 0x1a6   : > { %v2148_v46 = vadd.f32 %v2116_v32, %v2048_v62  ;;  %v1452_v47 = vadd.f32 %v1420_v35, %v1320_v12  ;;  %v1551_v3 = vadd.f32 %v1519_v2, %v1451_v24  ;;  %v1621_v33 = vmul.f32 %v4515_v58, %v3750_v53  ;;  %v5077_v24 = vld [vmem:[#allocation6_spill] sm:$0xff] }
 0x1a7   : > { %v4640_v59 = vsel %vm1203_vm3, %v2255_v51, %v3097_v23  ;;  %v2186_v4 = vadd.f32 %v4480_v20, %v2147_v6  ;;  %1251 = vst.msk [vmem:[#allocation2 + $0x178] sm:$0xff] %vm1203_vm3, %v1196_v42  ;;  %v1720_v63 = vmul.f32 %v4521_v40, %v3752_v30  ;;  %v1721_v0 = vmul.f32 %v4542_v25, %v3752_v30 }
 0x1a8   : > { %v2187_v5 = vadd.f32 %v4480_v20, %v2148_v46  ;;  %v1552_v16 = vadd.f32 %v1520_v19, %v1452_v47  ;;  %v1652_v11 = vadd.f32 %v1620_v10, %v1551_v3  ;;  %v1820_v23 = vmul.f32 %v4544_v45, %v3754_v31  ;;  %v5079_v19 = vld [vmem:[#allocation19_spill] sm:$0xff]  ;;  %v5080_v46 = vld [vmem:[#allocation21_spill] sm:$0xff] }
 0x1a9   : > { %v4662_v22 = vsel %vm1203_vm3, %v2254_v21, %v3096_v44  ;;  %v2218_v32 = vmax.f32 %v2186_v4, 0.0  ;;  %v1821_v61 = vmul.f32 %v4550_v43, %v3754_v31  ;;  %v1921_v39 = vmul.f32 %v3758_v55, %v4637_v60 }
 0x1aa   : > { %v2219_v14 = vmax.f32 %v2187_v5, 0.0  ;;  %v1653_v51 = vadd.f32 %v1621_v33, %v1552_v16  ;;  %v1752_v28 = vadd.f32 %v1720_v63, %v1652_v11  ;;  %v1922_v12 = vmul.f32 %v3758_v55, %v4648_v27 }
 0x1ab   : > { %v2250_v18 = vmin.f32 %v2218_v32, 6.0  ;;  %v2021_v44 = vmul.f32 %v3760_v34, %v4653_v8  ;;  %v2022_v21 = vmul.f32 %v3760_v34, %v4655_v9  ;;  %v2121_v13 = vmul.f32 %v3762_v37, %v4657_v15 }
 0x1ac   : > { %v2251_v57 = vmin.f32 %v2219_v14, 6.0  ;;  %v1753_v1 = vadd.f32 %v1721_v0, %v1653_v51  ;;  %v1852_v62 = vadd.f32 %v1820_v23, %v1752_v28  ;;  %v2122_v35 = vmul.f32 %v3762_v37, %v4668_v48  ;;  %v5082_v0 = vld [vmem:[#allocation23_spill] sm:$0xff]  ;;  %v5083_v28 = vld [vmem:[#allocation16_spill] sm:$0xff] }
 0x1ad   : > { %v5078_v2 = vunpack.i.l.bf16 %v5077_v24  ;;  %v3107_v42 = vunpack.i.h.bf16 %v4672_v38  ;;  %v721_v10 = vadd.f32 %v4142_v41, %v5079_v19  ;;  %v724_v47 = vadd.f32 %v4142_v41, %v5080_v46 }
 0x1ae   : > { %v5081_v3 = vunpack.i.h.bf16 %v5077_v24  ;;  %v1853_v4 = vadd.f32 %v1821_v61, %v1753_v1  ;;  %v1953_v63 = vadd.f32 %v1921_v39, %v1852_v62  ;;  %v729_v5 = vadd.f32 %v4142_v41, %v5082_v0  ;;  %v5085_v61 = vld [vmem:[#allocation24_spill] sm:$0xff] }
 0x1af   : > { %v2507_v6 = vsel %vm1203_vm3, %v2250_v18, %v5078_v2  ;;  %v3106_v11 = vunpack.i.l.bf16 %v4672_v38  ;;  %v791_v23 = vmax.f32 %v721_v10, 0.0  ;;  %v792_v32 = vmax.f32 %v724_v47, 0.0  ;;  %v5084_v18 = vld [vmem:[#allocation20_spill] sm:$0xff] }
 0x1b0   : > { %v2508_v33 = vsel %vm1203_vm3, %v2251_v57, %v5081_v3  ;;  %v1954_v14 = vadd.f32 %v1922_v12, %v1853_v4  ;;  %v2053_v51 = vadd.f32 %v2021_v44, %v1953_v63  ;;  %v2526_v2 = vpack.c.bf16 %v5084_v18, %v5083_v28  ;;  %v5086_v44 = vld [vmem:[#allocation22_spill] sm:$0xff]  ;;  %v3159_v38 = vld [vmem:[%s4999_s2] ss:$0 sm:$0xff] }
 0x1b1   : > { %v2533_v16 = vpack.c.bf16 %v2508_v33, %v2507_v6  ;;  %v793_v19 = vmax.f32 %v729_v5, 0.0  ;;  %v845_v24 = vmin.f32 %v791_v23, 6.0  ;;  %v846_v57 = vmin.f32 %v792_v32, 6.0  ;;  %v4735_v23 = vld [vmem:[#allocation2 + $0x150] sm:$0xff]  ;;  %v4737_v32 = vld [vmem:[#allocation2 + $0x158] sm:$0xff] }
 0x1b2   : > { %v732_v39 = vadd.f32 %v4142_v41, %v5085_v61  ;;  %v1321_v1 = vmul.f32 %v4513_v54, %v3732_v29  ;;  %v2054_v62 = vadd.f32 %v2022_v21, %v1954_v14  ;;  %v2153_v6 = vadd.f32 %v2121_v13, %v2053_v51 }
 0x1b3   : > { %2998 = vmatprep.subr.msk.bf16.mxu1 %vm2558_vm6, %v2533_v16  ;;  %v847_v12 = vmin.f32 %v793_v19, 6.0  ;;  %v2527_v10 = vpack.c.bf16 %v4291_v56, %v5086_v44  ;;  %v5087_v46 = vpack.c.bf16 %v4539_v17, %v4510_v7  ;;  %v1197_v47 = vmul.f32 %v3730_v26, %v845_v24  ;;  %1253 = vst.msk [vmem:[#allocation2 + $0x188] sm:$0xff] %vm1203_vm3, %v846_v57  ;;  %v4745_v19 = vld [vmem:[#allocation2 + $0x151] sm:$0xff]  ;;  %v4747_v24 = vld [vmem:[#allocation2 + $0x159] sm:$0xff] }
 0x1b4   : > { %2869 = vmatpush3.bf16.xpose.msra.mxu1 %v4623_v36  ;;  %v794_v41 = vmax.f32 %v732_v39, 0.0  ;;  %v1322_v54 = vmul.f32 %v4515_v58, %v3732_v29  ;;  %v1421_v36 = vmul.f32 %v4521_v40, %v3740_v49  ;;  %v2154_v21 = vadd.f32 %v2122_v35, %v2054_v62 }
 0x1b5   : > { %2999 = vmatprep.subr.msk.bf16.mxu1 %vm2558_vm6, %v5087_v46  ;;  %v2192_v13 = vadd.f32 %v4480_v20, %v2153_v6  ;;  %v1199_v56 = vmul.f32 %v3748_v52, %v847_v12  ;;  %v1422_v7 = vmul.f32 %v4542_v25, %v3740_v49  ;;  %1252 = vst.msk [vmem:[#allocation2 + $0x180] sm:$0xff] %vm1203_vm3, %v1197_v47  ;;  %v2566_v51 = vsel %vm2558_vm6, %v2526_v2, 0  ;;  %v4754_v2 = vld [vmem:[#allocation2 + $0x15a] sm:$0xff] }
 0x1b6   : > { %v848_v26 = vmin.f32 %v794_v41, 6.0  ;;  %v1453_v17 = vadd.f32 %v1421_v36, %v1321_v1  ;;  %v1521_v3 = vmul.f32 %v4544_v45, %v3742_v50  ;;  %v1522_v58 = vmul.f32 %v4550_v43, %v3742_v50  ;;  %v5088_v36 = vld [vmem:[#allocation25_spill] sm:$0xff] }
 0x1b7   : > { %v2193_v40 = vadd.f32 %v4480_v20, %v2154_v21  ;;  %v2224_v35 = vmax.f32 %v2192_v13, 0.0  ;;  %1254 = vst.msk [vmem:[#allocation2 + $0x190] sm:$0xff] %vm1203_vm3, %v1199_v56  ;;  %v1454_v33 = vadd.f32 %v1422_v7, %v1322_v54  ;;  %v1622_v52 = vmul.f32 %v4637_v60, %v3750_v53  ;;  %v5089_v56 = vld [vmem:[#allocation26_spill] sm:$0xff] }
 0x1b8   : > { %v1200_v25 = vmul.f32 0.0, %v848_v26  ;;  %v1553_v4 = vadd.f32 %v1521_v3, %v1453_v17  ;;  %v1623_v63 = vmul.f32 %v4648_v27, %v3750_v53  ;;  %v1722_v45 = vmul.f32 %v4653_v8, %v3752_v30 }
 0x1b9   : > { %v2225_v0 = vmax.f32 %v2193_v40, 0.0  ;;  %v2256_v5 = vmin.f32 %v2224_v35, 6.0  ;;  %v1554_v43 = vadd.f32 %v1522_v58, %v1454_v33  ;;  %v1723_v16 = vmul.f32 %v4655_v9, %v3752_v30 }
 0x1ba   : > { %v2535_v14 = vpack.c.bf16 %v4640_v59, %v4662_v22  ;;  %1255 = vst.msk [vmem:[#allocation2 + $0x198] sm:$0xff] %vm1203_vm3, %v1200_v25  ;;  %v1654_v28 = vadd.f32 %v1622_v52, %v1553_v4  ;;  %v1822_v18 = vmul.f32 %v4657_v15, %v3754_v31  ;;  %v2569_v61 = vsel %vm2558_vm6, %v2527_v10, 0  ;;  %v4752_v22 = vld [vmem:[#allocation2 + $0x152] sm:$0xff]  ;;  %v5091_v25 = vld [vmem:[#allocation28_spill] sm:$0xff] }
 0x1bb   : > { %v2257_v57 = vmin.f32 %v2225_v0, 6.0  ;;  %v1655_v39 = vadd.f32 %v1623_v63, %v1554_v43  ;;  %v1823_v59 = vmul.f32 %v4668_v48, %v3754_v31  ;;  %v2513_v1 = vsel %vm1203_vm3, %v2256_v5, %v3106_v11  ;;  %v5090_v52 = vld [vmem:[#allocation27_spill] sm:$0xff] }
 0x1bc   : > { %2871 = vmatpush3.bf16.xpose.msra.mxu1 %v2566_v51  ;;  %v1754_v62 = vadd.f32 %v1722_v45, %v1654_v28  ;;  %v1923_v6 = vmul.f32 %v3758_v55, %v4735_v23  ;;  %v1924_v12 = vmul.f32 %v3758_v55, %v4737_v32  ;;  %v2023_v46 = vmul.f32 %v3760_v34, %v4745_v19 }
 0x1bd   : > { %3000 = vmatprep.subr.msk.bf16.mxu1 %vm2558_vm6, %v2535_v14  ;;  %v2514_v44 = vsel %vm1203_vm3, %v2257_v57, %v3107_v42  ;;  %v1755_v10 = vadd.f32 %v1723_v16, %v1655_v39  ;;  %v2024_v11 = vmul.f32 %v3760_v34, %v4747_v24  ;;  %v2123_v41 = vmul.f32 %v3762_v37, %v4752_v22  ;;  %v3115_v57 = vpop.permute.xlu1 %3114 }
 0x1be   : > { %v1854_v47 = vadd.f32 %v1822_v18, %v1754_v62  ;;  %v2124_v54 = vmul.f32 %v3762_v37, %v4754_v2  ;;  %v737_v42 = vadd.f32 %v3159_v38, %v5088_v36  ;;  %v2536_v21 = vpack.c.bf16 %v2514_v44, %v2513_v1 }
 0x1bf   : > { %v1855_v13 = vadd.f32 %v1823_v59, %v1755_v10  ;;  %v740_v7 = vadd.f32 %v3159_v38, %v5089_v56  ;;  %v1323_v26 = vmul.f32 %v4637_v60, %v3732_v29  ;;  %v1324_v58 = vmul.f32 %v4648_v27, %v3732_v29 }
 0x1c0   : > { %v1955_v17 = vadd.f32 %v1923_v6, %v1854_v47  ;;  %v795_v3 = vmax.f32 %v737_v42, 0.0  ;;  %v1423_v40 = vmul.f32 %v4653_v8, %v3740_v49  ;;  %v2528_v4 = vpack.c.bf16 %v5091_v25, %v5090_v52  ;;  %v4813_v47 = vld [vmem:[#allocation2 + $0x169] sm:$0xff]  ;;  %v4817_v42 = vld [vmem:[#allocation2 + $0x171] sm:$0xff] }
 0x1c1   : > { %v1956_v35 = vadd.f32 %v1924_v12, %v1855_v13  ;;  %v796_v33 = vmax.f32 %v740_v7, 0.0  ;;  %v1424_v63 = vmul.f32 %v4655_v9, %v3740_v49  ;;  %v1523_v60 = vmul.f32 %v4657_v15, %v3742_v50  ;;  %v4805_v12 = vld [vmem:[#allocation2 + $0x170] sm:$0xff] }
 0x1c2   : > { %v2055_v45 = vadd.f32 %v2023_v46, %v1955_v17  ;;  %v849_v0 = vmin.f32 %v795_v3, 6.0  ;;  %v1455_v5 = vadd.f32 %v1423_v40, %v1323_v26  ;;  %v1524_v8 = vmul.f32 %v4668_v48, %v3742_v50  ;;  %v4823_v17 = vld [vmem:[#allocation2 + $0x172] sm:$0xff]  ;;  %v4825_v3 = vpop.permute.xlu1 %3124 }
 0x1c3   : > { %v2056_v43 = vadd.f32 %v2024_v11, %v1956_v35  ;;  %v850_v27 = vmin.f32 %v796_v33, 6.0  ;;  %v1456_v16 = vadd.f32 %v1424_v63, %v1324_v58  ;;  %v1624_v9 = vmul.f32 %v4735_v23, %v3750_v53 }
 0x1c4   : > { %2873 = vmatpush3.bf16.xpose.msra.mxu1 %v2569_v61  ;;  %v2155_v14 = vadd.f32 %v2123_v41, %v2055_v45  ;;  %v1201_v51 = vmul.f32 0.0, %v849_v0  ;;  %v1555_v28 = vadd.f32 %v1523_v60, %v1455_v5  ;;  %v1625_v15 = vmul.f32 %v4737_v32, %v3750_v53  ;;  %v4797_v61 = vld [vmem:[#allocation2 + $0x168] sm:$0xff] }
 0x1c5   : > { %3001 = vmatprep.subr.msk.bf16.mxu1 %vm2558_vm6, %v2536_v21  ;;  %v2156_v18 = vadd.f32 %v2124_v54, %v2056_v43  ;;  %v1202_v39 = vmul.f32 0.0, %v850_v27  ;;  %v1556_v59 = vadd.f32 %v1524_v8, %v1456_v16  ;;  %v1724_v62 = vmul.f32 %v4745_v19, %v3752_v30  ;;  %v4819_v21 = vld [vmem:[#allocation2 + $0x16a] sm:$0xff] }
 0x1c6   : > { %v2194_v1 = vadd.f32 %v4480_v20, %v2155_v14  ;;  %1256 = vst.msk [vmem:[#allocation2 + $0x1a0] sm:$0xff] %vm1203_vm3, %v1201_v51  ;;  %v1656_v48 = vadd.f32 %v1624_v9, %v1555_v28  ;;  %v1725_v6 = vmul.f32 %v4747_v24, %v3752_v30  ;;  %v1824_v46 = vmul.f32 %v4752_v22, %v3754_v31  ;;  %v5092_v28 = vld [vmem:[#allocation29_spill] sm:$0xff]  ;;  %v5093_v9 = vld [vmem:[#allocation30_spill] sm:$0xff] }
 0x1c7   : > { %v2195_v44 = vadd.f32 %v4480_v20, %v2156_v18  ;;  %1257 = vst.msk [vmem:[#allocation2 + $0x1a8] sm:$0xff] %vm1203_vm3, %v1202_v39  ;;  %v1657_v10 = vadd.f32 %v1625_v15, %v1556_v59  ;;  %v1825_v11 = vmul.f32 %v4754_v2, %v3754_v31  ;;  %v3116_v54 = vunpack.i.l.bf16 %v3115_v57  ;;  %v5095_v39 = vld [vmem:[#allocation32_spill] sm:$0xff] }
 0x1c8   : > { %v2226_v41 = vmax.f32 %v2194_v1, 0.0  ;;  %v1756_v38 = vadd.f32 %v1724_v62, %v1656_v48  ;;  %v1925_v36 = vmul.f32 %v3758_v55, %v4797_v61  ;;  %v3117_v56 = vunpack.i.h.bf16 %v3115_v57  ;;  %v5094_v57 = vld [vmem:[#allocation31_spill] sm:$0xff] }
 0x1c9   : > { %v2227_v13 = vmax.f32 %v2195_v44, 0.0  ;;  %v1757_v7 = vadd.f32 %v1725_v6, %v1657_v10  ;;  %v1926_v26 = vmul.f32 %v3758_v55, %v4805_v12  ;;  %v2572_v40 = vsel %vm2558_vm6, %v2528_v4, 0 }
 0x1ca   : > { %v2258_v58 = vmin.f32 %v2226_v41, 6.0  ;;  %v1856_v35 = vadd.f32 %v1824_v46, %v1756_v38  ;;  %v2025_v33 = vmul.f32 %v3760_v34, %v4813_v47  ;;  %v2026_v63 = vmul.f32 %v3760_v34, %v4817_v42 }
 0x1cb   : > { %v2259_v52 = vmin.f32 %v2227_v13, 6.0  ;;  %v1857_v25 = vadd.f32 %v1825_v11, %v1757_v7  ;;  %v2125_v45 = vmul.f32 %v3762_v37, %v4819_v21  ;;  %v2126_v60 = vmul.f32 %v3762_v37, %v4823_v17  ;;  %v1891_v11 = vld [vmem:[#allocation2 + $0x180] sm:$0xff] }
 0x1cc   : > { %2875 = vmatpush3.bf16.xpose.msra.mxu1 %v2572_v40  ;;  %v2515_v0 = vsel %vm1203_vm3, %v2258_v58, %v3116_v54  ;;  %v1957_v5 = vadd.f32 %v1925_v36, %v1856_v35  ;;  %v3127_v4 = vunpack.i.h.bf16 %v4825_v3  ;;  %v1325_v16 = vmul.f32 %v4735_v23, %v3732_v29  ;;  %v2091_v58 = vld [vmem:[#allocation2 + $0x182] sm:$0xff] }
 0x1cd   : > { %v2516_v43 = vsel %vm1203_vm3, %v2259_v52, %v3117_v56  ;;  %v1958_v27 = vadd.f32 %v1926_v26, %v1857_v25  ;;  %v1326_v8 = vmul.f32 %v4737_v32, %v3732_v29  ;;  %v2529_v18 = vpack.c.bf16 %v5093_v9, %v5092_v28  ;;  %v1991_v26 = vld [vmem:[#allocation2 + $0x181] sm:$0xff]  ;;  %v5097_v9 = vld [vmem:[#allocation11_spill] sm:$0xff] }
 0x1ce   : > { %v2537_v14 = vpack.c.bf16 %v2516_v43, %v2515_v0  ;;  %v2057_v51 = vadd.f32 %v2025_v33, %v1957_v5  ;;  %v2530_v59 = vpack.c.bf16 %v5095_v39, %v5094_v57  ;;  %v1425_v1 = vmul.f32 %v4745_v19, %v3740_v49  ;;  %v5096_v28 = vld [vmem:[#allocation9_spill] sm:$0xff] }
 0x1cf   : > { %v2058_v15 = vadd.f32 %v2026_v63, %v1958_v27  ;;  %v1426_v48 = vmul.f32 %v4747_v24, %v3740_v49  ;;  %v1525_v23 = vmul.f32 %v4752_v22, %v3742_v50  ;;  %v3126_v62 = vunpack.i.l.bf16 %v4825_v3  ;;  %v1992_v3 = vld [vmem:[#allocation2 + $0x189] sm:$0xff] }
 0x1d0   : > { %3002 = vmatprep.subr.msk.bf16.mxu1 %vm2558_vm6, %v2537_v14  ;;  %v2157_v32 = vadd.f32 %v2125_v45, %v2057_v51  ;;  %v1526_v6 = vmul.f32 %v4754_v2, %v3742_v50  ;;  %v1626_v44 = vmul.f32 %v4797_v61, %v3750_v53  ;;  %v1457_v46 = vadd.f32 %v1425_v1, %v1325_v16  ;;  %v1892_v2 = vld [vmem:[#allocation2 + $0x188] sm:$0xff] }
 0x1d1   : > { %v2158_v10 = vadd.f32 %v2126_v60, %v2058_v15  ;;  %v1458_v19 = vadd.f32 %v1426_v48, %v1326_v8  ;;  %v1627_v24 = vmul.f32 %v4805_v12, %v3750_v53  ;;  %v2575_v41 = vsel %vm2558_vm6, %v2529_v18, 0  ;;  %v2092_v27 = vld [vmem:[#allocation2 + $0x18a] sm:$0xff] }
 0x1d2   : > { %v2196_v22 = vadd.f32 %v4480_v20, %v2157_v32  ;;  %v2578_v54 = vsel %vm2558_vm6, %v2530_v59, 0  ;;  %v1726_v38 = vmul.f32 %v4813_v47, %v3752_v30  ;;  %v1557_v13 = vadd.f32 %v1525_v23, %v1457_v46 }
 0x1d3   : > { %v2197_v36 = vadd.f32 %v4480_v20, %v2158_v10  ;;  %v1558_v56 = vadd.f32 %v1526_v6, %v1458_v19  ;;  %v1727_v7 = vmul.f32 %v4817_v42, %v3752_v30  ;;  %v1826_v35 = vmul.f32 %v4819_v21, %v3754_v31 }
 0x1d4   : > { %2877 = vmatpush3.bf16.xpose.msra.mxu1 %v2575_v41  ;;  %v2228_v40 = vmax.f32 %v2196_v22, 0.0  ;;  %v1827_v33 = vmul.f32 %v4823_v17, %v3754_v31  ;;  %v1927_v52 = vmul.f32 %v3758_v55, %v1891_v11  ;;  %v1658_v63 = vadd.f32 %v1626_v44, %v1557_v13  ;;  %v5100_v41 = vld [vmem:[#allocation8_spill] sm:$0xff] }
 0x1d5   : > { %v2229_v25 = vmax.f32 %v2197_v36, 0.0  ;;  %v1659_v45 = vadd.f32 %v1627_v24, %v1558_v56  ;;  %v1928_v0 = vmul.f32 %v3758_v55, %v1892_v2  ;;  %v2027_v60 = vmul.f32 %v3760_v34, %v1991_v26 }
 0x1d6   : > { %v2260_v5 = vmin.f32 %v2228_v40, 6.0  ;;  %v2028_v43 = vmul.f32 %v3760_v34, %v1992_v3  ;;  %v2127_v16 = vmul.f32 %v3762_v37, %v2091_v58  ;;  %v1758_v14 = vadd.f32 %v1726_v38, %v1658_v63 }
 0x1d7   : > { %v2261_v8 = vmin.f32 %v2229_v25, 6.0  ;;  %v1759_v51 = vadd.f32 %v1727_v7, %v1659_v45  ;;  %v2531_v18 = vpack.c.bf16 %v5097_v9, %v5096_v28  ;;  %v1327_v39 = vmul.f32 %v4797_v61, %v3732_v29  ;;  %v1894_v7 = vld [vmem:[#allocation2 + $0x1a0] sm:$0xff] }
 0x1d8   : > { %v2517_v57 = vsel %vm1203_vm3, %v2260_v5, %v3126_v62  ;;  %v1328_v59 = vmul.f32 %v4805_v12, %v3732_v29  ;;  %v1427_v15 = vmul.f32 %v4813_v47, %v3740_v49  ;;  %v1858_v48 = vadd.f32 %v1826_v35, %v1758_v14  ;;  %v3135_v47 = vpop.permute.xlu1 %3134 }
 0x1d9   : > { %v2518_v1 = vsel %vm1203_vm3, %v2261_v8, %v3127_v4  ;;  %v1859_v23 = vadd.f32 %v1827_v33, %v1759_v51  ;;  %v2128_v32 = vmul.f32 %v3762_v37, %v2092_v27  ;;  %v1428_v44 = vmul.f32 %v4817_v42, %v3740_v49  ;;  %v5098_v42 = vld [vmem:[#allocation13_spill] sm:$0xff] }
 0x1da   : > { %v2538_v6 = vpack.c.bf16 %v2518_v1, %v2517_v57  ;;  %v1459_v62 = vadd.f32 %v1427_v15, %v1327_v39  ;;  %v1527_v61 = vmul.f32 %v4819_v21, %v3742_v50  ;;  %v1959_v10 = vadd.f32 %v1927_v52, %v1858_v48  ;;  %v1993_v52 = vld [vmem:[#allocation2 + $0x199] sm:$0xff] }
 0x1db   : > { %v1960_v46 = vadd.f32 %v1928_v0, %v1859_v23  ;;  %v1528_v29 = vmul.f32 %v4823_v17, %v3742_v50  ;;  %v1628_v12 = vmul.f32 %v1891_v11, %v3750_v53  ;;  %v1460_v4 = vadd.f32 %v1428_v44, %v1328_v59  ;;  %v1893_v17 = vld [vmem:[#allocation2 + $0x198] sm:$0xff]  ;;  %v1994_v0 = vld [vmem:[#allocation2 + $0x1a1] sm:$0xff] }
 0x1dc   : > { %3003 = vmatprep.subr.msk.bf16.mxu1 %vm2558_vm6, %v2538_v6  ;;  %v1559_v19 = vadd.f32 %v1527_v61, %v1459_v62  ;;  %v1629_v24 = vmul.f32 %v1892_v2, %v3750_v53  ;;  %v1728_v49 = vmul.f32 %v1991_v26, %v3752_v30  ;;  %v5099_v22 = vunpack.i.l.bf16 %v5098_v42  ;;  %v5102_v2 = vld [vmem:[#allocation7_spill] sm:$0xff] }
 0x1dd   : > { %2879 = vmatpush3.bf16.xpose.msra.mxu1 %v2578_v54  ;;  %v2059_v38 = vadd.f32 %v2027_v60, %v1959_v10  ;;  %v2060_v50 = vadd.f32 %v2028_v43, %v1960_v46  ;;  %v1560_v11 = vadd.f32 %v1528_v29, %v1460_v4  ;;  %v1729_v13 = vmul.f32 %v1992_v3, %v3752_v30  ;;  %v2093_v60 = vld [vmem:[#allocation2 + $0x19a] sm:$0xff] }
 0x1de   : > { %v4903_v21 = vsel %vm1203_vm3, %v5100_v41, %v5099_v22  ;;  %v1660_v36 = vadd.f32 %v1628_v12, %v1559_v19  ;;  %v1828_v56 = vmul.f32 %v2091_v58, %v3754_v31  ;;  %v5101_v53 = vunpack.i.h.bf16 %v5098_v42  ;;  %v3145_v12 = vpop.permute.xlu1 %3144 }
 0x1df   : > { %v2159_v40 = vadd.f32 %v2127_v16, %v2059_v38  ;;  %v2160_v35 = vadd.f32 %v2128_v32, %v2060_v50  ;;  %v3137_v33 = vunpack.i.h.bf16 %v3135_v47  ;;  %v1661_v54 = vadd.f32 %v1629_v24, %v1560_v11  ;;  %v3160_v50 = vld [vmem:[%s4387_s10] sm:$0xff]  }
 0x1e0   : > { %v2506_v26 = vsel %vm1203_vm3, %v5102_v2, %v5101_v53  ;;  %v1760_v25 = vadd.f32 %v1728_v49, %v1660_v36  ;;  %v1829_v63 = vmul.f32 %v2092_v27, %v3754_v31  ;;  %v1929_v45 = vmul.f32 %v3758_v55, %v1893_v17  ;;  %v2542_v31 = vld [vmem:[%s5003_s6 + $0x8] sm:$0xff]  ;;  %v2541_v27 = vld [vmem:[%s5003_s6] sm:$0xff] }
 0x1e1   : > { %v2198_v30 = vadd.f32 %v4480_v20, %v2159_v40  ;;  %v2199_v3 = vadd.f32 %v4480_v20, %v2160_v35  ;;  %v3136_v58 = vunpack.i.l.bf16 %v3135_v47  ;;  %v1930_v5 = vmul.f32 %v3758_v55, %v1894_v7  ;;  %v2094_v55 = vld [vmem:[#allocation2 + $0x1a2] sm:$0xff] }
 0x1e2   : > { %v1761_v43 = vadd.f32 %v1729_v13, %v1661_v54  ;;  %v1860_v16 = vadd.f32 %v1828_v56, %v1760_v25  ;;  %v2029_v8 = vmul.f32 %v3760_v34, %v1993_v52  ;;  %v2532_v14 = vpack.c.bf16 %v2506_v26, %v4903_v21 }
 0x1e3   : > { %v2230_v51 = vmax.f32 %v2198_v30, 0.0  ;;  %v2231_v57 = vmax.f32 %v2199_v3, 0.0  ;;  %v2030_v39 = vmul.f32 %v3760_v34, %v1994_v0  ;;  %v2129_v1 = vmul.f32 %v3762_v37, %v2093_v60 }
 0x1e4   : > { %v1861_v59 = vadd.f32 %v1829_v63, %v1761_v43  ;;  %v1961_v15 = vadd.f32 %v1929_v45, %v1860_v16  ;;  %v3244_v48 = vmov 0   ;;  %v2130_v62 = vmul.f32 %v3762_v37, %v2094_v55 }
 0x1e5   : > { %3149 = vset.pattern.permute.xlu1 %v3244_v48  ;;  %3148 = vset.pattern.permute.xlu0 %v3244_v48  ;;  %v2262_v23 = vmin.f32 %v2230_v51, 6.0  ;;  %v2263_v32 = vmin.f32 %v2231_v57, 6.0  ;;  %v2581_v47 = vsel %vm2558_vm6, %v2531_v18, 0  ;;  %v3146_v49 = vunpack.i.l.bf16 %v3145_v12 }
 0x1e6   : > { %2550 = vperm.xlu1 %3149, %v2542_v31   ;;  %2545 = vperm.xlu0 %3148, %v2541_v27   ;;  %v1962_v6 = vadd.f32 %v1930_v5, %v1861_v59  ;;  %v2061_v44 = vadd.f32 %v2029_v8, %v1961_v15  ;;  %v3147_v41 = vunpack.i.h.bf16 %v3145_v12  ;;  %v2584_v18 = vsel %vm2558_vm6, %v2532_v14, 0 }
 0x1e7   : > { %v2520_v61 = vsel %vm1203_vm3, %v2263_v32, %v3137_v33  ;;  %v2519_v34 = vsel %vm1203_vm3, %v2262_v23, %v3136_v58 }
 0x1e8   : > { %v2539_v10 = vpack.c.bf16 %v2520_v61, %v2519_v34  ;;  %v2062_v46 = vadd.f32 %v2030_v39, %v1962_v6  ;;  %v2161_v29 = vadd.f32 %v2129_v1, %v2061_v44 }
 0x1ea   : > { %3004 = vmatprep.subr.msk.bf16.mxu1 %vm2558_vm6, %v2539_v10  ;;  %v2162_v4 = vadd.f32 %v2130_v62, %v2062_v46  ;;  %v2200_v19 = vadd.f32 %v4480_v20, %v2161_v29 }
 0x1eb   : > { %2881 = vmatpush3.bf16.xpose.msra.mxu1 %v2581_v47 }
 0x1ec   : > { %v2201_v37 = vadd.f32 %v4480_v20, %v2162_v4  ;;  %v2232_v24 = vmax.f32 %v2200_v19, 0.0 }
 0x1ee   : > { %v2233_v42 = vmax.f32 %v2201_v37, 0.0  ;;  %v2264_v22 = vmin.f32 %v2232_v24, 6.0 }
 0x1f0   : > { %v2265_v21 = vmin.f32 %v2233_v42, 6.0  ;;  %v2521_v38 = vsel %vm1203_vm3, %v2264_v22, %v3146_v49 }
 0x1f2   : > { %v2522_v28 = vsel %vm1203_vm3, %v2265_v21, %v3147_v41 }
 0x1f3   : > { %v2540_v9 = vpack.c.bf16 %v2522_v28, %v2521_v38 }
 0x1f5   : > { %3005 = vmatprep.subr.msk.bf16.mxu1 %vm2558_vm6, %v2540_v9 }
 0x1f6   : > { %2883 = vmatpush3.bf16.xpose.msra.mxu1 %v2584_v18 }
 0x1fd   : > { %2885 = vmatmul.mubr.msk.bf16.vlgmr.msra.gmra.mrb[52].mxu1 %vm2558_vm6, %v3160_v50 }
 0x265   : > { %v2546_v20 = vpop.permute.xlu0 %2545  ;;  %v2551_v11 = vpop.permute.xlu1 %2550 }
 0x2d0   : > { %v2644_v17 = vpop.f32.mrb[52].mxu1 }
 0x2d1   : > { %v2646_v36 = vpop.f32.mrb[53].mxu1  ;;  %v2645_v13 = vadd.f32 %v2644_v17, %v2546_v20 }
 0x2d2   : > { %v2648_v56 = vpop.f32.mrb[54].mxu1  ;;  %v2647_v7 = vadd.f32 %v2646_v36, %v2546_v20 }
 0x2d3   : > { %v2649_v53 = vadd.f32 %v2648_v56, %v2551_v11  ;;  %2653 = vst [vmem:[%s300_s30] sm:$0xff] %v2645_v13  ;;  %v2650_v2 = vpop.f32.mrb[55].mxu1 }
 0x2d4   : > { %2654 = vst [vmem:[%s300_s30 + $0x8] sm:$0xff] %v2647_v7  ;;  %v2651_v26 = vadd.f32 %v2650_v2, %v2551_v11 }
 0x2d5   : > { %2655 = vst [vmem:[%s300_s30 + $0x10] sm:$0xff] %v2649_v53 }
 0x2d6   : > { %2656 = vst [vmem:[%s300_s30 + $0x18] sm:$0xff] %v2651_v26 }
 0x2d7   : > { %3174 = shalt.err (!%p3171_p5)
}
 0x2d8   : > { %s3175_s21 = scalar_lea.hbm %s4949_s15, 512  ;;  %s3179_s30 = scalar_lea.hbm %s5004_s7, 1024 }
 0x2d9   : > { %p3176_p6 = scmp.ne.s32.totalorder %s4949_s15, %s3175_s21  ;;  %p3180_p10 = scmp.lt.u32.totalorder %s4949_s15, %s5004_s7 }
 0x2da   : > { %p3181_p11 = scmp.lt.u32.totalorder %s3179_s30, %s3175_s21  ;;  %p3183_p13 = scmp.lt.u32.totalorder %s3175_s21, %s4949_s15 }
 0x2db   : > { %p3177_p7 = pnand %p3176_p6, %p3328_p4 }
 0x2dc   : > { %p3182_p12 = por %p3181_p11, %p3180_p10 }
 0x2dd   : > { %p3178_p9 = pneg %p3177_p7 }
 0x2de   : > { %p3184_p0 = por %p3183_p13, %p3182_p12 }
 0x2e0   : > { %p3185_p1 = pnand %p3184_p0, %p3178_p9 }
 0x2e2   : > { %3188 = shalt.err (!%p3185_p1)
}
 0x2e3   : > { %s3246_s12 = smov 256   ;;  %s3247_s16 = smov 16  }
 0x2e4   : > { %3007 = dma.vmem_to_hbm [thread:$0]  (%p3328_p4), %s4944_s8, 512, %s4949_s15, %s4951_s27, %s3246_s12, %s3246_s12, %s3247_s16  }
 0x2e5 PF: > { %p3013_p2 = scmp.ge.s32.totalorder %s3239_s29, 2  ;;  %s2688_s18 = sand.u32 1, %s3219_s24  }
 0x2e6   : > { %s2689_s19 = scalar_lea.sflag [#allocation4], %s2688_s18 }
 0x2e7   : > { %p3010_p3 = pnand %p3013_p2, %p3335_p8 }
 0x2e9   : > { %3214 = dma.done.wait (!%p3010_p3), %s2689_s19, 512  }
 0x2ea   : > { %3216 = vsyncadd (!%p3010_p3), %s2689_s19, 4294966784  ;;  %s20_s29 = sadd.s32 1, %s3239_s29   ;;  %s5103_s24 = smov %s3223_s25 }
 0x2eb   : > { %p17_p5 = scmp.ge.s32.totalorder %s20_s29, 4   ;;  %s5104_s25 = smov %s3227_s26 }
 0x2ec   : > { %s5105_s26 = smov %s3341_s14  ;;  %s5106_s27 = smov %s3235_s28 }
 0x2ed   : > { %s5107_s28 = smov %s5109_s9  ;;  %19 = sbr.rel (!%p17_p5) target bundleno = 4 (0x4), region = 89 }
 0x2f4   :  { %2694 = vsyncpa [#allocation4], 1 }
 0x2f5   :  { %2696 = vsyncpa [#allocation4 + $0x1], 1 }

</bundles_post_ra>
